<compile_context>
chip_gen: v5e
topology: v5e:2x2
jax: 0.10.0
libtpu: 0.0.40
codegen_flags: <defaults>
</compile_context>

<pallas_src>
import functools

import numpy as np

import jax
import jax.numpy as jnp
from jax import lax
from jax.experimental import pallas as pl
from jax.experimental.pallas import tpu as pltpu

# ----------------------------- config ---------------------------------------
N_FEATS = 16          # channels (n_feats)
KS = 3                # kernel_size
PAD = KS // 2         # "same" padding
RES_SCALE = 1.0       # res_scale
BATCH = 2
H = 16
W = 16


# ----------------------------- kernel ---------------------------------------
def resblock_kernel(x_ref, band1_ref, b1_ref, band2_ref, b2_ref, out_ref):
    """One grid step processes `nb` images (nb = batch on 1-TC chips, 1 on 2-TC).

    x_ref     : (nb, H, W*C)      lane-dense input, lane = (w, c)      (VMEM, f32)
    band1_ref : (KS, W*C, W*C)    conv1 per-H-tap lane-banded weights  (VMEM, bf16)
    b1_ref    : (1, W*C)          conv1 bias tiled over w              (VMEM, f32)
    band2_ref : (KS, W*C, W*C)    conv2 per-H-tap lane-banded weights  (VMEM, bf16)
    b2_ref    : (1, W*C)          conv2 bias tiled over w              (VMEM, f32)
    out_ref   : (nb, H, W*C)      output                               (VMEM, f32)
    """
    nb, h, wc = x_ref.shape
    m = nb * h
    x = x_ref[...].reshape(m, wc)                      # (m, wc) f32

    # Per-image top/bottom row masks (H halo handled in-value, no HBM padding).
    row = lax.broadcasted_iota(jnp.int32, (m, wc), 0) % h
    is_top = row == 0
    is_bot = row == (h - 1)
    zrow = jnp.zeros((1, wc), jnp.float32)

    def conv3x3(a, band_ref, bias_ref):
        # H taps: row r uses a[r-1], a[r], a[r+1] (zero outside each image).
        dn = jnp.where(is_top, 0.0, jnp.concatenate([zrow, a[: m - 1, :]], axis=0))
        up = jnp.where(is_bot, 0.0, jnp.concatenate([a[1:, :], zrow], axis=0))
        # 3 accumulating banded matmuls (K = wc each), bf16 in / f32 accumulate.
        acc = jnp.dot(dn.astype(jnp.bfloat16), band_ref[0],
                      preferred_element_type=jnp.float32)
        acc = acc + jnp.dot(a.astype(jnp.bfloat16), band_ref[1],
                            preferred_element_type=jnp.float32)
        acc = acc + jnp.dot(up.astype(jnp.bfloat16), band_ref[2],
                            preferred_element_type=jnp.float32)
        return acc + bias_ref[...]

    mid = jnp.maximum(conv3x3(x, band1_ref, b1_ref), 0.0)     # conv1 + ReLU
    res = conv3x3(mid, band2_ref, b2_ref)                     # conv2
    if RES_SCALE != 1.0:                                      # trace-time const
        res = res * RES_SCALE
    out_ref[...] = (res + x).astype(out_ref.dtype).reshape(nb, h, wc)


# ----------------------- weight prep (hoisted, once per weight set) ----------
def _band_weights(w_oihw, width):
    """OIHW conv weights -> per-H-tap lane-banded matrices (KS, W*Cin, W*Cout), bf16.

    band[i, w_in*Cin + c_in, w_out*Cout + c_out] = Wt[i, j, c_in, c_out]
        with j = w_in - w_out + PAD if 0 <= j < KS (else 0),
    i.e. the W-direction taps + "same" W zero padding become a block-banded
    matmul along the lane axis; only the H taps stay explicit (index i).
    """
    c_out, c_in, ks, _ = w_oihw.shape
    pad = ks // 2
    w_hwio = jnp.transpose(w_oihw, (2, 3, 1, 0))             # (KS, KS, Cin, Cout)
    ind = np.zeros((ks, width, width), np.float32)           # [j, w_in, w_out]
    for j in range(ks):
        for wo in range(width):
            wi = wo + j - pad
            if 0 <= wi < width:
                ind[j, wi, wo] = 1.0
    band = jnp.einsum('jab,ijcd->iacbd', jnp.asarray(ind), w_hwio)
    return band.reshape(ks, width * c_in, width * c_out).astype(jnp.bfloat16)


def prepare_params(w1_oihw, b1, w2_oihw, b2, width):
    """Per-weight-set prep (NOT in the per-forward path)."""
    c = b1.shape[0]
    band1 = _band_weights(w1_oihw, width)
    band2 = _band_weights(w2_oihw, width)
    b1_t = jnp.tile(b1, width).reshape(1, width * c).astype(jnp.float32)
    b2_t = jnp.tile(b2, width).reshape(1, width * c).astype(jnp.float32)
    return band1, b1_t, band2, b2_t


# ----------------------------- pallas wrapper ---------------------------------
def _single_tensorcore_chip():
    """True for 1-TC inference chips (v5e/v6e) -> fold batch into one grid step."""
    try:
        kind = jax.devices()[0].device_kind.lower()
    except Exception:
        return False
    return any(t in kind for t in ("v5 lite", "v5e", "v5litepod", "v6 lite", "v6e"))


def resblock_lane_dense(x2d, band1, b1_t, band2, b2_t, images_per_step):
    """Core ResBlock on the lane-dense (N, H, W*C) layout (stackable)."""
    n, h, wc = x2d.shape
    nb = images_per_step
    ks = band1.shape[0]

    flops = 4 * n * h * ks * wc * wc                 # 2 convs x 2 flops/MAC
    bytes_accessed = (2 * n * h * wc * 4             # x in + out
                      + band1.size * 2 + band2.size * 2
                      + b1_t.size * 4 + b2_t.size * 4)

    return pl.pallas_call(
        resblock_kernel,
        out_shape=jax.ShapeDtypeStruct((n, h, wc), x2d.dtype),
        grid_spec=pltpu.PrefetchScalarGridSpec(
            num_scalar_prefetch=0,
            grid=(n // nb,),
            in_specs=[
                pl.BlockSpec((nb, h, wc), lambda i: (i, 0, 0)),
                pl.BlockSpec((ks, wc, wc), lambda i: (0, 0, 0)),
                pl.BlockSpec((1, wc), lambda i: (0, 0)),
                pl.BlockSpec((ks, wc, wc), lambda i: (0, 0, 0)),
                pl.BlockSpec((1, wc), lambda i: (0, 0)),
            ],
            out_specs=pl.BlockSpec((nb, h, wc), lambda i: (i, 0, 0)),
        ),
        compiler_params=pltpu.CompilerParams(
            dimension_semantics=("parallel",)),
        cost_estimate=pl.CostEstimate(flops=flops, transcendentals=0,
                                      bytes_accessed=bytes_accessed),
    )(x2d, band1, b1_t, band2, b2_t)


@functools.partial(jax.jit, static_argnums=(5,))
def resblock_pallas(x_nchw, band1, b1_t, band2, b2_t, images_per_step):
    """x_nchw: (N, C, H, W) f32 -> (N, C, H, W) f32 (PyTorch semantics).

    The NCHW<->lane-dense transposes sit only at the edges; in a full EDSR body
    with stacked ResBlocks they would be done once for the whole network.
    """
    n, c, h, w = x_nchw.shape
    x2d = jnp.transpose(x_nchw, (0, 2, 3, 1)).reshape(n, h, w * c)
    out2d = resblock_lane_dense(x2d, band1, b1_t, band2, b2_t, images_per_step)
    return jnp.transpose(out2d.reshape(n, h, w, c), (0, 3, 1, 2))


# ----------------------------- reference -------------------------------------
def resblock_reference(x_nchw, w1_oihw, b1, w2_oihw, b2):
    dn = lax.conv_dimension_numbers(x_nchw.shape, w1_oihw.shape,
                                    ("NCHW", "OIHW", "NCHW"))

    def conv(x, wgt, bias):
        y = lax.conv_general_dilated(x, wgt, window_strides=(1, 1),
                                     padding=[(PAD, PAD), (PAD, PAD)],
                                     dimension_numbers=dn)
        return y + bias.reshape(1, -1, 1, 1)

    mid = jnp.maximum(conv(x_nchw, w1_oihw, b1), 0.0)
    res = conv(mid, w2_oihw, b2) * RES_SCALE
    return res + x_nchw


# ----------------------------- main -------------------------------------------
if __name__ == "__main__":
    key = jax.random.PRNGKey(0)
    kx, kw1, kb1, kw2, kb2 = jax.random.split(key, 5)

    x = jax.random.normal(kx, (BATCH, N_FEATS, H, W), jnp.float32)
    # Deterministic synthetic parameters (PyTorch conv weight layout OIHW).
    w1 = jax.random.normal(kw1, (N_FEATS, N_FEATS, KS, KS), jnp.float32) * 0.05
    b1 = jax.random.normal(kb1, (N_FEATS,), jnp.float32) * 0.05
    w2 = jax.random.normal(kw2, (N_FEATS, N_FEATS, KS, KS), jnp.float32) * 0.05
    b2 = jax.random.normal(kb2, (N_FEATS,), jnp.float32) * 0.05

    # Hoisted weight prep (once per weight set, not per forward).
    band1, b1_t, band2, b2_t = prepare_params(w1, b1, w2, b2, W)

    # Batch folded on 1-TC chips (v5e/v6e); kept on the parallel grid otherwise.
    images_per_step = BATCH if _single_tensorcore_chip() else 1

    out = resblock_pallas(x, band1, b1_t, band2, b2_t, images_per_step)
    out = jax.block_until_ready(out)

    ref = resblock_reference(x, w1, b1, w2, b2)
    assert out.shape == ref.shape == (BATCH, N_FEATS, H, W)
    # bf16 weights/LHS with f32 accumulation -> relaxed tolerance vs f32 reference.
    assert jnp.allclose(out, ref, atol=5e-2, rtol=5e-2), \
        f"max abs err = {jnp.max(jnp.abs(out - ref))}"

    print("KERNEL_OK")
</pallas_src>

<mosaic_0001>
module attributes {stable_mosaic.version = 11 : i64} {
  func.func @resblock_kernel(%arg0: i32, %arg1: memref<1x16x256xf32, #tpu.memory_space<vmem>>, %arg2: memref<3x256x256xbf16, #tpu.memory_space<vmem>>, %arg3: memref<1x256xf32, #tpu.memory_space<vmem>>, %arg4: memref<3x256x256xbf16, #tpu.memory_space<vmem>>, %arg5: memref<1x256xf32, #tpu.memory_space<vmem>>, %arg6: memref<1x16x256xf32, #tpu.memory_space<vmem>>) attributes {dimension_semantics = [#tpu.dimension_semantics<parallel>], iteration_bounds = array<i64: 2>, scalar_prefetch = 0 : i64, scratch_operands = 0 : i64, tpu.core_type = #tpu.core_type<tc>, window_params = [{transform_indices = @transform_0, window_bounds = array<i64: 1, 16, 256>}, {pipeline_mode = #tpu.pipeline_mode<synchronous>, transform_indices = @transform_1, window_bounds = array<i64: 3, 256, 256>}, {pipeline_mode = #tpu.pipeline_mode<synchronous>, transform_indices = @transform_2, window_bounds = array<i64: 1, 256>}, {pipeline_mode = #tpu.pipeline_mode<synchronous>, transform_indices = @transform_3, window_bounds = array<i64: 3, 256, 256>}, {pipeline_mode = #tpu.pipeline_mode<synchronous>, transform_indices = @transform_4, window_bounds = array<i64: 1, 256>}, {transform_indices = @transform_5, window_bounds = array<i64: 1, 16, 256>}]} {
    %c0 = arith.constant 0 : index
    %c0_0 = arith.constant 0 : index
    %c0_1 = arith.constant 0 : index
    %0 = vector.load %arg1[%c0, %c0_0, %c0_1] : memref<1x16x256xf32, #tpu.memory_space<vmem>>, vector<1x16x256xf32>
    %1 = vector.shape_cast %0 : vector<1x16x256xf32> to vector<16x256xf32>
    %2 = tpu.iota {dimensions = array<i32: 0>} : vector<16x256xi32>
    %c16_i32 = arith.constant 16 : i32
    %c0_i32 = arith.constant 0 : i32
    %3 = arith.cmpi eq, %c16_i32, %c0_i32 : i32
    %c1_i32 = arith.constant 1 : i32
    %4 = arith.select %3, %c1_i32, %c16_i32 : i32
    %5 = vector.broadcast %4 : i32 to vector<16x256xi32>
    %6 = arith.remsi %2, %5 : vector<16x256xi32>
    %c0_i32_2 = arith.constant 0 : i32
    %7 = vector.broadcast %c0_i32_2 : i32 to vector<16x256xi32>
    %8 = arith.cmpi ne, %6, %7 : vector<16x256xi32>
    %c0_i32_3 = arith.constant 0 : i32
    %9 = vector.broadcast %c0_i32_3 : i32 to vector<16x256xi32>
    %10 = arith.cmpi slt, %6, %9 : vector<16x256xi32>
    %c0_i32_4 = arith.constant 0 : i32
    %11 = arith.cmpi slt, %4, %c0_i32_4 : i32
    %12 = vector.broadcast %11 : i1 to vector<16x256xi1>
    %13 = vector.broadcast %12 : vector<16x256xi1> to vector<16x256xi1>
    %14 = arith.xori %10, %13 : vector<16x256xi1>
    %15 = arith.andi %14, %8 : vector<16x256xi1>
    %16 = vector.broadcast %4 : i32 to vector<16x256xi32>
    %17 = arith.addi %6, %16 : vector<16x256xi32>
    %18 = arith.select %15, %17, %6 : vector<16x256xi1>, vector<16x256xi32>
    %c0_i32_5 = arith.constant 0 : i32
    %19 = vector.broadcast %c0_i32_5 : i32 to vector<16x256xi32>
    %20 = arith.cmpi eq, %18, %19 : vector<16x256xi32>
    %c15_i32 = arith.constant 15 : i32
    %21 = vector.broadcast %c15_i32 : i32 to vector<16x256xi32>
    %22 = arith.cmpi eq, %18, %21 : vector<16x256xi32>
    %cst = arith.constant 0.000000e+00 : f32
    %23 = vector.broadcast %cst : f32 to vector<1x256xf32>
    %24 = vector.extract_strided_slice %1 {offsets = [0, 0], sizes = [15, 256], strides = [1, 1]} : vector<16x256xf32> to vector<15x256xf32>
    %25 = tpu.concatenate %23, %24 in 0 : vector<1x256xf32>, vector<15x256xf32> -> vector<16x256xf32>
    %cst_6 = arith.constant 0.000000e+00 : f32
    %26 = vector.broadcast %cst_6 : f32 to vector<16x256xf32>
    %27 = arith.select %20, %26, %25 : vector<16x256xi1>, vector<16x256xf32>
    %28 = vector.extract_strided_slice %1 {offsets = [1, 0], sizes = [15, 256], strides = [1, 1]} : vector<16x256xf32> to vector<15x256xf32>
    %29 = tpu.concatenate %28, %23 in 0 : vector<15x256xf32>, vector<1x256xf32> -> vector<16x256xf32>
    %cst_7 = arith.constant 0.000000e+00 : f32
    %30 = vector.broadcast %cst_7 : f32 to vector<16x256xf32>
    %31 = arith.select %22, %30, %29 : vector<16x256xi1>, vector<16x256xf32>
    %32 = arith.truncf %27 : vector<16x256xf32> to vector<16x256xbf16>
    %c0_8 = arith.constant 0 : index
    %c0_9 = arith.constant 0 : index
    %c0_10 = arith.constant 0 : index
    %33 = vector.load %arg2[%c0_8, %c0_9, %c0_10] : memref<3x256x256xbf16, #tpu.memory_space<vmem>>, vector<1x256x256xbf16>
    %34 = vector.shape_cast %33 : vector<1x256x256xbf16> to vector<256x256xbf16>
    %cst_11 = arith.constant dense<0.000000e+00> : vector<16x256xf32>
    %35 = tpu.matmul %32, %34, %cst_11 {dimension_numbers = #tpu.dot_dimension_numbers<[1], [0], [0], [1], [0, 0, 1, 1], [], []>} : vector<16x256xbf16>, vector<256x256xbf16>, vector<16x256xf32> -> vector<16x256xf32>
    %36 = arith.truncf %1 : vector<16x256xf32> to vector<16x256xbf16>
    %c1 = arith.constant 1 : index
    %c0_12 = arith.constant 0 : index
    %c0_13 = arith.constant 0 : index
    %37 = vector.load %arg2[%c1, %c0_12, %c0_13] : memref<3x256x256xbf16, #tpu.memory_space<vmem>>, vector<1x256x256xbf16>
    %38 = vector.shape_cast %37 : vector<1x256x256xbf16> to vector<256x256xbf16>
    %cst_14 = arith.constant dense<0.000000e+00> : vector<16x256xf32>
    %39 = tpu.matmul %36, %38, %cst_14 {dimension_numbers = #tpu.dot_dimension_numbers<[1], [0], [0], [1], [0, 0, 1, 1], [], []>} : vector<16x256xbf16>, vector<256x256xbf16>, vector<16x256xf32> -> vector<16x256xf32>
    %40 = arith.addf %35, %39 : vector<16x256xf32>
    %41 = arith.truncf %31 : vector<16x256xf32> to vector<16x256xbf16>
    %c2 = arith.constant 2 : index
    %c0_15 = arith.constant 0 : index
    %c0_16 = arith.constant 0 : index
    %42 = vector.load %arg2[%c2, %c0_15, %c0_16] : memref<3x256x256xbf16, #tpu.memory_space<vmem>>, vector<1x256x256xbf16>
    %43 = vector.shape_cast %42 : vector<1x256x256xbf16> to vector<256x256xbf16>
    %cst_17 = arith.constant dense<0.000000e+00> : vector<16x256xf32>
    %44 = tpu.matmul %41, %43, %cst_17 {dimension_numbers = #tpu.dot_dimension_numbers<[1], [0], [0], [1], [0, 0, 1, 1], [], []>} : vector<16x256xbf16>, vector<256x256xbf16>, vector<16x256xf32> -> vector<16x256xf32>
    %45 = arith.addf %40, %44 : vector<16x256xf32>
    %c0_18 = arith.constant 0 : index
    %c0_19 = arith.constant 0 : index
    %46 = vector.load %arg3[%c0_18, %c0_19] : memref<1x256xf32, #tpu.memory_space<vmem>>, vector<1x256xf32>
    %47 = vector.broadcast %46 : vector<1x256xf32> to vector<16x256xf32>
    %48 = arith.addf %45, %47 : vector<16x256xf32>
    %cst_20 = arith.constant 0.000000e+00 : f32
    %49 = vector.broadcast %cst_20 : f32 to vector<16x256xf32>
    %50 = arith.maximumf %48, %49 : vector<16x256xf32>
    %51 = vector.extract_strided_slice %50 {offsets = [0, 0], sizes = [15, 256], strides = [1, 1]} : vector<16x256xf32> to vector<15x256xf32>
    %52 = tpu.concatenate %23, %51 in 0 : vector<1x256xf32>, vector<15x256xf32> -> vector<16x256xf32>
    %cst_21 = arith.constant 0.000000e+00 : f32
    %53 = vector.broadcast %cst_21 : f32 to vector<16x256xf32>
    %54 = arith.select %20, %53, %52 : vector<16x256xi1>, vector<16x256xf32>
    %55 = vector.extract_strided_slice %50 {offsets = [1, 0], sizes = [15, 256], strides = [1, 1]} : vector<16x256xf32> to vector<15x256xf32>
    %56 = tpu.concatenate %55, %23 in 0 : vector<15x256xf32>, vector<1x256xf32> -> vector<16x256xf32>
    %cst_22 = arith.constant 0.000000e+00 : f32
    %57 = vector.broadcast %cst_22 : f32 to vector<16x256xf32>
    %58 = arith.select %22, %57, %56 : vector<16x256xi1>, vector<16x256xf32>
    %59 = arith.truncf %54 : vector<16x256xf32> to vector<16x256xbf16>
    %c0_23 = arith.constant 0 : index
    %c0_24 = arith.constant 0 : index
    %c0_25 = arith.constant 0 : index
    %60 = vector.load %arg4[%c0_23, %c0_24, %c0_25] : memref<3x256x256xbf16, #tpu.memory_space<vmem>>, vector<1x256x256xbf16>
    %61 = vector.shape_cast %60 : vector<1x256x256xbf16> to vector<256x256xbf16>
    %cst_26 = arith.constant dense<0.000000e+00> : vector<16x256xf32>
    %62 = tpu.matmul %59, %61, %cst_26 {dimension_numbers = #tpu.dot_dimension_numbers<[1], [0], [0], [1], [0, 0, 1, 1], [], []>} : vector<16x256xbf16>, vector<256x256xbf16>, vector<16x256xf32> -> vector<16x256xf32>
    %63 = arith.truncf %50 : vector<16x256xf32> to vector<16x256xbf16>
    %c1_27 = arith.constant 1 : index
    %c0_28 = arith.constant 0 : index
    %c0_29 = arith.constant 0 : index
    %64 = vector.load %arg4[%c1_27, %c0_28, %c0_29] : memref<3x256x256xbf16, #tpu.memory_space<vmem>>, vector<1x256x256xbf16>
    %65 = vector.shape_cast %64 : vector<1x256x256xbf16> to vector<256x256xbf16>
    %cst_30 = arith.constant dense<0.000000e+00> : vector<16x256xf32>
    %66 = tpu.matmul %63, %65, %cst_30 {dimension_numbers = #tpu.dot_dimension_numbers<[1], [0], [0], [1], [0, 0, 1, 1], [], []>} : vector<16x256xbf16>, vector<256x256xbf16>, vector<16x256xf32> -> vector<16x256xf32>
    %67 = arith.addf %62, %66 : vector<16x256xf32>
    %68 = arith.truncf %58 : vector<16x256xf32> to vector<16x256xbf16>
    %c2_31 = arith.constant 2 : index
    %c0_32 = arith.constant 0 : index
    %c0_33 = arith.constant 0 : index
    %69 = vector.load %arg4[%c2_31, %c0_32, %c0_33] : memref<3x256x256xbf16, #tpu.memory_space<vmem>>, vector<1x256x256xbf16>
    %70 = vector.shape_cast %69 : vector<1x256x256xbf16> to vector<256x256xbf16>
    %cst_34 = arith.constant dense<0.000000e+00> : vector<16x256xf32>
    %71 = tpu.matmul %68, %70, %cst_34 {dimension_numbers = #tpu.dot_dimension_numbers<[1], [0], [0], [1], [0, 0, 1, 1], [], []>} : vector<16x256xbf16>, vector<256x256xbf16>, vector<16x256xf32> -> vector<16x256xf32>
    %72 = arith.addf %67, %71 : vector<16x256xf32>
    %c0_35 = arith.constant 0 : index
    %c0_36 = arith.constant 0 : index
    %73 = vector.load %arg5[%c0_35, %c0_36] : memref<1x256xf32, #tpu.memory_space<vmem>>, vector<1x256xf32>
    %74 = vector.broadcast %73 : vector<1x256xf32> to vector<16x256xf32>
    %75 = arith.addf %72, %74 : vector<16x256xf32>
    %76 = arith.addf %75, %1 : vector<16x256xf32>
    %77 = vector.shape_cast %76 : vector<16x256xf32> to vector<1x16x256xf32>
    %c0_37 = arith.constant 0 : index
    %c0_38 = arith.constant 0 : index
    %c0_39 = arith.constant 0 : index
    %78 = vector.load %arg6[%c0_37, %c0_38, %c0_39] : memref<1x16x256xf32, #tpu.memory_space<vmem>>, vector<1x16x256xf32>
    tpu.vector_store %arg6[%c0_37, %c0_38, %c0_39], %77 {strides = array<i32>} : memref<1x16x256xf32, #tpu.memory_space<vmem>>, vector<1x16x256xf32>,
    return
  }
  func.func @transform_0(%arg0: i32) -> (i32, i32, i32) {
    %c0_i32 = arith.constant 0 : i32
    %c0_i32_0 = arith.constant 0 : i32
    %c0_i32_1 = arith.constant 0 : i32
    return %arg0, %c0_i32, %c0_i32_0 : i32, i32, i32
  }
  func.func @transform_1(%arg0: i32) -> (i32, i32, i32) {
    %c0_i32 = arith.constant 0 : i32
    %c0_i32_0 = arith.constant 0 : i32
    %c0_i32_1 = arith.constant 0 : i32
    %c0_i32_2 = arith.constant 0 : i32
    return %c0_i32, %c0_i32_0, %c0_i32_1 : i32, i32, i32
  }
  func.func @transform_2(%arg0: i32) -> (i32, i32) {
    %c0_i32 = arith.constant 0 : i32
    %c0_i32_0 = arith.constant 0 : i32
    %c0_i32_1 = arith.constant 0 : i32
    return %c0_i32, %c0_i32_0 : i32, i32
  }
  func.func @transform_3(%arg0: i32) -> (i32, i32, i32) {
    %c0_i32 = arith.constant 0 : i32
    %c0_i32_0 = arith.constant 0 : i32
    %c0_i32_1 = arith.constant 0 : i32
    %c0_i32_2 = arith.constant 0 : i32
    return %c0_i32, %c0_i32_0, %c0_i32_1 : i32, i32, i32
  }
  func.func @transform_4(%arg0: i32) -> (i32, i32) {
    %c0_i32 = arith.constant 0 : i32
    %c0_i32_0 = arith.constant 0 : i32
    %c0_i32_1 = arith.constant 0 : i32
    return %c0_i32, %c0_i32_0 : i32, i32
  }
  func.func @transform_5(%arg0: i32) -> (i32, i32, i32) {
    %c0_i32 = arith.constant 0 : i32
    %c0_i32_0 = arith.constant 0 : i32
    %c0_i32_1 = arith.constant 0 : i32
    return %arg0, %c0_i32, %c0_i32_0 : i32, i32, i32
  }
}

</mosaic_0001>

<bundles_post_ra>
// kernel: resblock_pallas.1
= control target key start
LH: loop header
LB: loop body
LE: loop exit
PB: predicated region body
PF: predicated region fallthrough
CT: control target
= control target key end

     0   :  { %s3152_s18 = smov 0   ;;  %s4486_s0 = inlined_call_operand.vmem [shape: f32[2,16,256], index: 0, kind: input, shape index: {}]   ;;  %s4487_s1 = inlined_call_operand.vmem [shape: bf16[3,256,256], index: 1, kind: input, shape index: {}]   ;;  %s4488_s2 = inlined_call_operand.vmem [shape: f32[1,256], index: 2, kind: input, shape index: {}]   ;;  %s4489_s3 = inlined_call_operand.vmem [shape: bf16[3,256,256], index: 3, kind: input, shape index: {}]   ;;  %s4490_s4 = inlined_call_operand.vmem [shape: f32[1,256], index: 4, kind: input, shape index: {}]   ;;  %s4491_s5 = inlined_call_operand.vmem [shape: f32[2,16,256], index: 5, kind: output, shape index: {}]  }
   0x1 LB: > { %s1933_s19 = sadd.s32 4294967295, %s3119_s18   ;;  %p1937_p0 = scmp.ge.s32.totalorder %s3119_s18, 1  ;;  %s3119_s18 = sphi %s3152_s18, %s15_s18  }
   0x2   : > { %p187_p1 = scmp.lt.s32.totalorder %s3119_s18, 3 }
   0x4   : > { %p188_p2 = pnand %p1937_p0, %p187_p1 }
   0x5   : > { %p215_p3 = scmp.lt.s32.totalorder (!%p188_p2), %s1933_s19, 1 }
   0x6   : > { %191 = sbr.rel (%p188_p2) target bundleno = 442 (0x1ba), region = 40 }
   0xb   : > { %v2032_v0 = vld [vmem:[%s4487_s1 + $0x170] sm:$0xf]  ;;  %v2953_v1 = vld [vmem:[%s4487_s1 + $0x174] sm:$0xf0]  ;;  %v2952_v5 = vld [vmem:[%s4487_s1 + $0x174] sm:$0xf] }
   0xc   : > { %v2096_v2 = vld [vmem:[%s4487_s1 + $0x1f0] sm:$0xf]  ;;  %v2033_v3 = vor.u32 %v2953_v1, %v2032_v0  ;;  %v2969_v4 = vld [vmem:[%s4487_s1 + $0x1f4] sm:$0xf0]  ;;  %v2034_v6 = vld [vmem:[%s4487_s1 + $0x178] sm:$0xf0] }
   0xd   : > { %v2097_v7 = vor.u32 %v2969_v4, %v2096_v2  ;;  %v2037_v8 = vor.u32 %v2952_v5, %v2034_v6  ;;  %v2968_v9 = vld [vmem:[%s4487_s1 + $0x1f4] sm:$0xf]  ;;  %v2098_v10 = vld [vmem:[%s4487_s1 + $0x1f8] sm:$0xf0]  ;;  %v2024_v11 = vld [vmem:[%s4487_s1 + $0x160] sm:$0xf] }
   0xe   : > { %527 = vmatpush.bf16.msra.mxu0 %v2033_v3  ;;  %v2101_v12 = vor.u32 %v2968_v9, %v2098_v10  ;;  %v2951_v13 = vld [vmem:[%s4487_s1 + $0x164] sm:$0xf0]  ;;  %v2088_v14 = vld [vmem:[%s4487_s1 + $0x1e0] sm:$0xf]  ;;  %v2950_v18 = vld [vmem:[%s4487_s1 + $0x164] sm:$0xf] }
   0xf   : > { %v2967_v15 = vld [vmem:[%s4487_s1 + $0x1e4] sm:$0xf0]  ;;  %541 = vmatpush.bf16.msra.mxu1 %v2097_v7  ;;  %555 = vmatpush.bf16.msra.mxu2 %v2037_v8  ;;  %v2025_v16 = vor.u32 %v2951_v13, %v2024_v11  ;;  %v2026_v19 = vld [vmem:[%s4487_s1 + $0x168] sm:$0xf0]  ;;  %v2966_v20 = vld [vmem:[%s4487_s1 + $0x1e4] sm:$0xf] }
  0x10   : > { %v2089_v17 = vor.u32 %v2967_v15, %v2088_v14  ;;  %569 = vmatpush.bf16.msra.mxu3 %v2101_v12  ;;  %v2029_v21 = vor.u32 %v2950_v18, %v2026_v19  ;;  %v2090_v22 = vld [vmem:[%s4487_s1 + $0x1e8] sm:$0xf0]  ;;  %v2016_v23 = vld [vmem:[%s4487_s1 + $0x150] sm:$0xf]  ;;  %v2949_v24 = vld [vmem:[%s4487_s1 + $0x154] sm:$0xf0] }
  0x11   : > { %v2093_v25 = vor.u32 %v2966_v20, %v2090_v22  ;;  %v2080_v26 = vld [vmem:[%s4487_s1 + $0x1d0] sm:$0xf]  ;;  %v2965_v27 = vld [vmem:[%s4487_s1 + $0x1d4] sm:$0xf0]  ;;  %v2948_v28 = vld [vmem:[%s4487_s1 + $0x154] sm:$0xf]  ;;  %v2017_v29 = vor.u32 %v2949_v24, %v2016_v23 }
  0x12   : > { %528 = vmatpush.bf16.msra.mxu0 %v2025_v16  ;;  %v2018_v30 = vld [vmem:[%s4487_s1 + $0x158] sm:$0xf0]  ;;  %v2964_v31 = vld [vmem:[%s4487_s1 + $0x1d4] sm:$0xf]  ;;  %v2081_v33 = vor.u32 %v2965_v27, %v2080_v26  ;;  %v2008_v35 = vld [vmem:[%s4487_s1 + $0x140] sm:$0xf] }
  0x13   : > { %v2082_v32 = vld [vmem:[%s4487_s1 + $0x1d8] sm:$0xf0]  ;;  %542 = vmatpush.bf16.msra.mxu1 %v2089_v17  ;;  %556 = vmatpush.bf16.msra.mxu2 %v2029_v21  ;;  %v2021_v34 = vor.u32 %v2948_v28, %v2018_v30  ;;  %v2947_v36 = vld [vmem:[%s4487_s1 + $0x144] sm:$0xf0]  ;;  %v2072_v37 = vld [vmem:[%s4487_s1 + $0x1c0] sm:$0xf] }
  0x14   : > { %570 = vmatpush.bf16.msra.mxu3 %v2093_v25  ;;  %v2085_v38 = vor.u32 %v2964_v31, %v2082_v32  ;;  %v2963_v39 = vld [vmem:[%s4487_s1 + $0x1c4] sm:$0xf0]  ;;  %v2946_v40 = vld [vmem:[%s4487_s1 + $0x144] sm:$0xf]  ;;  %v2010_v41 = vld [vmem:[%s4487_s1 + $0x148] sm:$0xf0]  ;;  %v2009_v44 = vor.u32 %v2947_v36, %v2008_v35 }
  0x15   : > { %v2962_v42 = vld [vmem:[%s4487_s1 + $0x1c4] sm:$0xf]  ;;  %v2074_v43 = vld [vmem:[%s4487_s1 + $0x1c8] sm:$0xf0]  ;;  %v2073_v45 = vor.u32 %v2963_v39, %v2072_v37  ;;  %v2013_v46 = vor.u32 %v2946_v40, %v2010_v41  ;;  %v2000_v47 = vld [vmem:[%s4487_s1 + $0x130] sm:$0xf] }
  0x16   : > { %529 = vmatpush.bf16.msra.mxu0 %v2017_v29  ;;  %v2945_v48 = vld [vmem:[%s4487_s1 + $0x134] sm:$0xf0]  ;;  %v2064_v49 = vld [vmem:[%s4487_s1 + $0x1b0] sm:$0xf]  ;;  %v2077_v50 = vor.u32 %v2962_v42, %v2074_v43  ;;  %v2944_v52 = vld [vmem:[%s4487_s1 + $0x134] sm:$0xf] }
  0x17   : > { %543 = vmatpush.bf16.msra.mxu1 %v2081_v33  ;;  %557 = vmatpush.bf16.msra.mxu2 %v2021_v34  ;;  %v2961_v51 = vld [vmem:[%s4487_s1 + $0x1b4] sm:$0xf0]  ;;  %v2002_v53 = vld [vmem:[%s4487_s1 + $0x138] sm:$0xf0]  ;;  %v2960_v54 = vld [vmem:[%s4487_s1 + $0x1b4] sm:$0xf]  ;;  %v2001_v56 = vor.u32 %v2945_v48, %v2000_v47 }
  0x18   : > { %571 = vmatpush.bf16.msra.mxu3 %v2085_v38  ;;  %v2066_v55 = vld [vmem:[%s4487_s1 + $0x1b8] sm:$0xf0]  ;;  %v2065_v57 = vor.u32 %v2961_v51, %v2064_v49  ;;  %v2005_v58 = vor.u32 %v2944_v52, %v2002_v53  ;;  %v1992_v59 = vld [vmem:[%s4487_s1 + $0x120] sm:$0xf]  ;;  %v2943_v60 = vld [vmem:[%s4487_s1 + $0x124] sm:$0xf0] }
  0x19   : > { %v2056_v61 = vld [vmem:[%s4487_s1 + $0x1a0] sm:$0xf]  ;;  %v2069_v62 = vor.u32 %v2960_v54, %v2066_v55  ;;  %v2959_v63 = vld [vmem:[%s4487_s1 + $0x1a4] sm:$0xf0]  ;;  %v2942_v0 = vld [vmem:[%s4487_s1 + $0x124] sm:$0xf]  ;;  %v1993_v4 = vor.u32 %v2943_v60, %v1992_v59 }
  0x1a   : > { %530 = vmatpush.bf16.msra.mxu0 %v2009_v44  ;;  %v1994_v1 = vld [vmem:[%s4487_s1 + $0x128] sm:$0xf0]  ;;  %v2958_v2 = vld [vmem:[%s4487_s1 + $0x1a4] sm:$0xf]  ;;  %v2057_v5 = vor.u32 %v2959_v63, %v2056_v61  ;;  %v1984_v7 = vld [vmem:[%s4487_s1 + $0x110] sm:$0xf] }
  0x1b   : > { %544 = vmatpush.bf16.msra.mxu1 %v2073_v45  ;;  %558 = vmatpush.bf16.msra.mxu2 %v2013_v46  ;;  %v2058_v3 = vld [vmem:[%s4487_s1 + $0x1a8] sm:$0xf0]  ;;  %v1997_v6 = vor.u32 %v2942_v0, %v1994_v1  ;;  %v2941_v8 = vld [vmem:[%s4487_s1 + $0x114] sm:$0xf0]  ;;  %v2048_v9 = vld [vmem:[%s4487_s1 + $0x190] sm:$0xf] }
  0x1c   : > { %572 = vmatpush.bf16.msra.mxu3 %v2077_v50  ;;  %v2061_v10 = vor.u32 %v2958_v2, %v2058_v3  ;;  %v2957_v11 = vld [vmem:[%s4487_s1 + $0x194] sm:$0xf0]  ;;  %v2940_v12 = vld [vmem:[%s4487_s1 + $0x114] sm:$0xf]  ;;  %v1986_v13 = vld [vmem:[%s4487_s1 + $0x118] sm:$0xf0]  ;;  %v1985_v16 = vor.u32 %v2941_v8, %v1984_v7 }
  0x1d   : > { %v2956_v14 = vld [vmem:[%s4487_s1 + $0x194] sm:$0xf]  ;;  %v2050_v15 = vld [vmem:[%s4487_s1 + $0x198] sm:$0xf0]  ;;  %v1976_v17 = vld [vmem:[%s4487_s1 + $0x100] sm:$0xf]  ;;  %v2049_v19 = vor.u32 %v2957_v11, %v2048_v9  ;;  %v1989_v20 = vor.u32 %v2940_v12, %v1986_v13 }
  0x1e   : > { %531 = vmatpush.bf16.msra.mxu0 %v2001_v56  ;;  %v2939_v18 = vld [vmem:[%s4487_s1 + $0x104] sm:$0xf0]  ;;  %v2040_v21 = vld [vmem:[%s4487_s1 + $0x180] sm:$0xf]  ;;  %v2938_v23 = vld [vmem:[%s4487_s1 + $0x104] sm:$0xf]  ;;  %v2053_v24 = vor.u32 %v2956_v14, %v2050_v15  ;;  %v229_v14 = vlaneseq }
  0x1f   : > { %545 = vmatpush.bf16.msra.mxu1 %v2065_v57  ;;  %559 = vmatpush.bf16.msra.mxu2 %v2005_v58  ;;  %v2955_v22 = vld [vmem:[%s4487_s1 + $0x184] sm:$0xf0]  ;;  %v1978_v25 = vld [vmem:[%s4487_s1 + $0x108] sm:$0xf0]  ;;  %v2954_v26 = vld [vmem:[%s4487_s1 + $0x184] sm:$0xf]  ;;  %v1977_v31 = vor.u32 %v2939_v18, %v1976_v17 }
  0x20   : > { %573 = vmatpush.bf16.msra.mxu3 %v2069_v62  ;;  %v2042_v27 = vld [vmem:[%s4487_s1 + $0x188] sm:$0xf0]  ;;  %v2160_v28 = vld [vmem:[%s4487_s1 + $0x70] sm:$0xf]  ;;  %v2921_v29 = vld [vmem:[%s4487_s1 + $0x74] sm:$0xf0]  ;;  %v2041_v35 = vor.u32 %v2955_v22, %v2040_v21  ;;  %v1981_v36 = vor.u32 %v2938_v23, %v1978_v25 }
  0x21   : > { %v2224_v30 = vld [vmem:[%s4487_s1 + $0xf0] sm:$0xf]  ;;  %v2937_v32 = vld [vmem:[%s4487_s1 + $0xf4] sm:$0xf0]  ;;  %v2920_v33 = vld [vmem:[%s4487_s1 + $0x74] sm:$0xf]  ;;  %v2045_v39 = vor.u32 %v2954_v26, %v2042_v27  ;;  %v2161_v40 = vor.u32 %v2921_v29, %v2160_v28 }
  0x22   : > { %532 = vmatpush.bf16.msra.mxu0 %v1993_v4  ;;  %v2162_v34 = vld [vmem:[%s4487_s1 + $0x78] sm:$0xf0]  ;;  %v2936_v37 = vld [vmem:[%s4487_s1 + $0xf4] sm:$0xf]  ;;  %v2225_v41 = vor.u32 %v2937_v32, %v2224_v30  ;;  %v2152_v43 = vld [vmem:[%s4487_s1 + $0x60] sm:$0xf] }
  0x23   : > { %546 = vmatpush.bf16.msra.mxu1 %v2057_v5  ;;  %560 = vmatpush.bf16.msra.mxu2 %v1997_v6  ;;  %v2226_v38 = vld [vmem:[%s4487_s1 + $0xf8] sm:$0xf0]  ;;  %v2165_v42 = vor.u32 %v2920_v33, %v2162_v34  ;;  %v2919_v44 = vld [vmem:[%s4487_s1 + $0x64] sm:$0xf0]  ;;  %v2216_v45 = vld [vmem:[%s4487_s1 + $0xe0] sm:$0xf] }
  0x24   : > { %574 = vmatpush.bf16.msra.mxu3 %v2061_v10  ;;  %v2229_v46 = vor.u32 %v2936_v37, %v2226_v38  ;;  %v2935_v47 = vld [vmem:[%s4487_s1 + $0xe4] sm:$0xf0]  ;;  %v2918_v48 = vld [vmem:[%s4487_s1 + $0x64] sm:$0xf]  ;;  %v2154_v49 = vld [vmem:[%s4487_s1 + $0x68] sm:$0xf0]  ;;  %v2153_v52 = vor.u32 %v2919_v44, %v2152_v43 }
  0x25   : > { %v2934_v50 = vld [vmem:[%s4487_s1 + $0xe4] sm:$0xf]  ;;  %v2218_v51 = vld [vmem:[%s4487_s1 + $0xe8] sm:$0xf0]  ;;  %v2144_v53 = vld [vmem:[%s4487_s1 + $0x50] sm:$0xf]  ;;  %v2217_v55 = vor.u32 %v2935_v47, %v2216_v45  ;;  %v2157_v56 = vor.u32 %v2918_v48, %v2154_v49 }
  0x26   : > { %533 = vmatpush.bf16.msra.mxu0 %v1985_v16  ;;  %v2917_v54 = vld [vmem:[%s4487_s1 + $0x54] sm:$0xf0]  ;;  %v2208_v57 = vld [vmem:[%s4487_s1 + $0xd0] sm:$0xf]  ;;  %s4499_s19 = smov (!%p215_p3, %s1933_s19), 1  ;;  %v2221_v59 = vor.u32 %v2934_v50, %v2218_v51  ;;  %v3496_v29 = vshrl.u32 %v229_v14, 7 }
  0x27   : > { %547 = vmatpush.bf16.msra.mxu1 %v2049_v19  ;;  %561 = vmatpush.bf16.msra.mxu2 %v1989_v20  ;;  %v2933_v58 = vld [vmem:[%s4487_s1 + $0xd4] sm:$0xf0]  ;;  %v2916_v60 = vld [vmem:[%s4487_s1 + $0x54] sm:$0xf]  ;;  %v2146_v61 = vld [vmem:[%s4487_s1 + $0x58] sm:$0xf0]  ;;  %v2145_v1 = vor.u32 %v2917_v54, %v2144_v53 }
  0x28   : > { %575 = vmatpush.bf16.msra.mxu3 %v2053_v24  ;;  %v2932_v62 = vld [vmem:[%s4487_s1 + $0xd4] sm:$0xf]  ;;  %v2210_v63 = vld [vmem:[%s4487_s1 + $0xd8] sm:$0xf0]  ;;  %v2136_v0 = vld [vmem:[%s4487_s1 + $0x40] sm:$0xf]  ;;  %v2209_v5 = vor.u32 %v2933_v58, %v2208_v57  ;;  %v2149_v6 = vor.u32 %v2916_v60, %v2146_v61 }
  0x29   : > { %s2904_s12 = sshll.u32 %s4499_s19, 5  ;;  %v2915_v2 = vld [vmem:[%s4487_s1 + $0x44] sm:$0xf0]  ;;  %v2200_v3 = vld [vmem:[%s4487_s1 + $0xc0] sm:$0xf]  ;;  %v2213_v10 = vor.u32 %v2932_v62, %v2210_v63  ;;  %vm264_vm0 = vcmask 1040384  }
  0x2a   : > { %534 = vmatpush.bf16.msra.mxu0 %v1977_v31  ;;  %v2931_v4 = vld [vmem:[%s4487_s1 + $0xc4] sm:$0xf0]  ;;  %s3448_s23 = scalar_lea.vmem %s4486_s0, %s2904_s12  ;;  %v2914_v11 = vld [vmem:[%s4487_s1 + $0x44] sm:$0xf]  ;;  %v2138_v12 = vld [vmem:[%s4487_s1 + $0x48] sm:$0xf0]  ;;  %v2137_v18 = vor.u32 %v2915_v2, %v2136_v0  ;;  %s4473_s26 = scalar_lea.vmem %s4491_s5, %s2904_s12 }
  0x2b   : > { %548 = vmatpush.bf16.msra.mxu1 %v2041_v35  ;;  %562 = vmatpush.bf16.msra.mxu2 %v1981_v36  ;;  %v3451_v7 = vld [vmem:[%s3448_s23] sm:$0xff]  ;;  %v3454_v8 = vld [vmem:[%s3448_s23 + $0x10] sm:$0xff]  ;;  %v3457_v9 = vld [vmem:[%s3448_s23 + $0x8] sm:$0xff]  ;;  %v2201_v21 = vor.u32 %v2931_v4, %v2200_v3  ;;  %v2141_v22 = vor.u32 %v2914_v11, %v2138_v12  ;;  %vm3121_vm2 = vmmov 1   ;;  %vm281_vm4 = vcmask 1046528  }
  0x2c   : > { %576 = vmatpush.bf16.msra.mxu3 %v2045_v39  ;;  %v3466_v13 = vld [vmem:[%s3448_s23 + $0x18] sm:$0xff]  ;;  %v2930_v15 = vld [vmem:[%s4487_s1 + $0xc4] sm:$0xf]  ;;  %v2202_v16 = vld [vmem:[%s4487_s1 + $0xc8] sm:$0xf0]  ;;  %v332_v17 = vpack.c.bf16 %v3454_v8, %v3451_v7  ;;  %v267_v57 = vrot.slane %v3454_v8, 7 }
  0x2d   : > { %v2128_v19 = vld [vmem:[%s4487_s1 + $0x30] sm:$0xf]  ;;  %v333_v20 = vpack.c.bf16 %v3466_v13, %v3457_v9  ;;  %v2913_v23 = vld [vmem:[%s4487_s1 + $0x34] sm:$0xf0]  ;;  %v2205_v26 = vor.u32 %v2930_v15, %v2202_v16  ;;  %v2912_v27 = vld [vmem:[%s4487_s1 + $0x34] sm:$0xf] }
  0x2e   : > { %743 = vmatpush.bf16.msrb.mxu0 %v2161_v40  ;;  %v2192_v24 = vld [vmem:[%s4487_s1 + $0xb0] sm:$0xf]  ;;  %v2929_v25 = vld [vmem:[%s4487_s1 + $0xb4] sm:$0xf0]  ;;  %v2130_v28 = vld [vmem:[%s4487_s1 + $0x38] sm:$0xf0]  ;;  %563 = vmatmul.bf16.vlgmr.msra.gmra.mxu2 %v332_v17  ;;  %v2129_v32 = vor.u32 %v2913_v23, %v2128_v19 }
  0x2f   : > { %757 = vmatpush.bf16.msrb.mxu1 %v2225_v41  ;;  %771 = vmatpush.bf16.msrb.mxu2 %v2165_v42  ;;  %v2928_v30 = vld [vmem:[%s4487_s1 + $0xb4] sm:$0xf]  ;;  %v2194_v31 = vld [vmem:[%s4487_s1 + $0xb8] sm:$0xf0]  ;;  %v2120_v33 = vld [vmem:[%s4487_s1 + $0x20] sm:$0xf]  ;;  %v2193_v34 = vor.u32 %v2929_v25, %v2192_v24  ;;  %v2133_v35 = vor.u32 %v2912_v27, %v2130_v28 }
  0x30   : > { %785 = vmatpush.bf16.msrb.mxu3 %v2229_v46  ;;  %535 = vmatmul.bf16.vlgmr.msra.gmra.mxu0 %v332_v17  ;;  %v2911_v36 = vld [vmem:[%s4487_s1 + $0x24] sm:$0xf0]  ;;  %v2184_v37 = vld [vmem:[%s4487_s1 + $0xa0] sm:$0xf]  ;;  %v2197_v39 = vor.u32 %v2928_v30, %v2194_v31  ;;  %v2910_v40 = vld [vmem:[%s4487_s1 + $0x24] sm:$0xf] }
  0x31   : > { %549 = vmatmul.bf16.vlgmr.msra.gmra.mxu1 %v333_v20  ;;  %577 = vmatmul.bf16.vlgmr.msra.gmra.mxu3 %v333_v20  ;;  %v2927_v38 = vld [vmem:[%s4487_s1 + $0xa4] sm:$0xf0]  ;;  %v2122_v41 = vld [vmem:[%s4487_s1 + $0x28] sm:$0xf0]  ;;  %v236_v42 = vand.u32 15, %v3496_v29  ;;  %v2121_v45 = vor.u32 %v2911_v36, %v2120_v33  ;;  %v266_v60 = vrot.slane %v3457_v9, 7 }
  0x32   : > { %744 = vmatpush.bf16.msrb.mxu0 %v2153_v52  ;;  %v2926_v43 = vld [vmem:[%s4487_s1 + $0xa4] sm:$0xf]  ;;  %v2186_v44 = vld [vmem:[%s4487_s1 + $0xa8] sm:$0xf0]  ;;  %v2185_v46 = vor.u32 %v2927_v38, %v2184_v37  ;;  %v2125_v47 = vor.u32 %v2910_v40, %v2122_v41  ;;  %v2112_v48 = vld [vmem:[%s4487_s1 + $0x10] sm:$0xf] }
  0x33   : > { %758 = vmatpush.bf16.msrb.mxu1 %v2217_v55  ;;  %772 = vmatpush.bf16.msrb.mxu2 %v2157_v56  ;;  %v2909_v49 = vld [vmem:[%s4487_s1 + $0x14] sm:$0xf0]  ;;  %v2176_v50 = vld [vmem:[%s4487_s1 + $0x90] sm:$0xf]  ;;  %v2189_v51 = vor.u32 %v2926_v43, %v2186_v44  ;;  %v2908_v53 = vld [vmem:[%s4487_s1 + $0x14] sm:$0xf] }
  0x34   : > { %786 = vmatpush.bf16.msrb.mxu3 %v2221_v59  ;;  %v2925_v52 = vld [vmem:[%s4487_s1 + $0x94] sm:$0xf0]  ;;  %v2114_v54 = vld [vmem:[%s4487_s1 + $0x18] sm:$0xf0]  ;;  %vm3547_vm1 = vcmp.ne.s32.totalorder %v236_v42, 0  ;;  %v265_v56 = vrot.slane %v3451_v7, 7  ;;  %v2113_v62 = vor.u32 %v2909_v49, %v2112_v48 }
  0x35   : > { %v2924_v58 = vld [vmem:[%s4487_s1 + $0x94] sm:$0xf]  ;;  %v2178_v59 = vld [vmem:[%s4487_s1 + $0x98] sm:$0xf0]  ;;  %v269_v61 = vrot.slane %v3466_v13, 7  ;;  %v2117_v2 = vor.u32 %v2908_v53, %v2114_v54  ;;  %v276_v31 = vsel %vm264_vm0, 0.0, %v266_v60  ;;  %vm3634_vm3 = vmpackc.low %vm3121_vm2, %vm3547_vm1 }
  0x36   : > { %745 = vmatpush.bf16.msrb.mxu0 %v2145_v1  ;;  %v2104_v63 = vld [vmem:[%s4487_s1] sm:$0xf]  ;;  %v2907_v0 = vld [vmem:[%s4487_s1 + $0x4] sm:$0xf0]  ;;  %v2177_v1 = vor.u32 %v2925_v52, %v2176_v50  ;;  %v2922_v11 = vld [vmem:[%s4487_s1 + $0x84] sm:$0xf]  ;;  %v268_v25 = vsel %vm264_vm0, %v265_v56, %v267_v57 }
  0x37   : > { %759 = vmatpush.bf16.msrb.mxu1 %v2209_v5  ;;  %773 = vmatpush.bf16.msrb.mxu2 %v2149_v6  ;;  %v2168_v3 = vld [vmem:[%s4487_s1 + $0x80] sm:$0xf]  ;;  %v2923_v4 = vld [vmem:[%s4487_s1 + $0x84] sm:$0xf0]  ;;  %v2906_v5 = vld [vmem:[%s4487_s1 + $0x4] sm:$0xf]  ;;  %v2181_v6 = vor.u32 %v2924_v58, %v2178_v59  ;;  %v2105_v17 = vor.u32 %v2907_v0, %v2104_v63  ;;  %v270_v30 = vsel %vm264_vm0, %v266_v60, %v269_v61 }
  0x38   : > { %787 = vmatpush.bf16.msrb.mxu3 %v2213_v10  ;;  %v2106_v10 = vld [vmem:[%s4487_s1 + $0x8] sm:$0xf0]  ;;  %v2336_v14 = vld [vmem:[%s4487_s1 + $0x270] sm:$0xf]  ;;  %v2985_v15 = vld [vmem:[%s4487_s1 + $0x274] sm:$0xf0]  ;;  %v2236_v43 = vpack.c.bf16 %v270_v30, %v276_v31 }
  0x39   : > { %v2170_v12 = vld [vmem:[%s4487_s1 + $0x88] sm:$0xf0]  ;;  %v2400_v16 = vld [vmem:[%s4487_s1 + $0x2f0] sm:$0xf]  ;;  %v2984_v19 = vld [vmem:[%s4487_s1 + $0x274] sm:$0xf]  ;;  %v2337_v28 = vor.u32 %v2985_v15, %v2336_v14 }
  0x3a   : > { %746 = vmatpush.bf16.msrb.mxu0 %v2137_v18  ;;  %v3001_v18 = vld [vmem:[%s4487_s1 + $0x2f4] sm:$0xf0]  ;;  %v2338_v20 = vld [vmem:[%s4487_s1 + $0x278] sm:$0xf0]  ;;  %v3000_v23 = vld [vmem:[%s4487_s1 + $0x2f4] sm:$0xf]  ;;  %v2173_v27 = vor.u32 %v2922_v11, %v2170_v12 }
  0x3b   : > { %760 = vmatpush.bf16.msrb.mxu1 %v2201_v21  ;;  %774 = vmatpush.bf16.msrb.mxu2 %v2141_v22  ;;  %v2169_v21 = vor.u32 %v2923_v4, %v2168_v3  ;;  %v2109_v22 = vor.u32 %v2906_v5, %v2106_v10  ;;  %v2402_v24 = vld [vmem:[%s4487_s1 + $0x2f8] sm:$0xf0]  ;;  %v2341_v33 = vor.u32 %v2984_v19, %v2338_v20  ;;  %v2392_v36 = vld [vmem:[%s4487_s1 + $0x2e0] sm:$0xf]  ;;  %v2982_v40 = vld [vmem:[%s4487_s1 + $0x264] sm:$0xf] }
  0x3c   : > { %788 = vmatpush.bf16.msrb.mxu3 %v2205_v26  ;;  %v275_v26 = vsel %vm264_vm0, 0.0, %v265_v56  ;;  %v2405_v37 = vor.u32 %v3000_v23, %v2402_v24  ;;  %v2330_v41 = vld [vmem:[%s4487_s1 + $0x268] sm:$0xf0]  ;;  %v2998_v44 = vld [vmem:[%s4487_s1 + $0x2e4] sm:$0xf] }
  0x3d   : > { %v2232_v38 = vpack.c.bf16 %v268_v25, %v275_v26  ;;  %v2333_v48 = vor.u32 %v2982_v40, %v2330_v41  ;;  %v2320_v49 = vld [vmem:[%s4487_s1 + $0x250] sm:$0xf]  ;;  %v2981_v50 = vld [vmem:[%s4487_s1 + $0x254] sm:$0xf0]  ;;  %v2980_v54 = vld [vmem:[%s4487_s1 + $0x254] sm:$0xf] }
  0x3e   : > { %747 = vmatpush.bf16.msrb.mxu0 %v2129_v32  ;;  %v2401_v32 = vor.u32 %v3001_v18, %v2400_v16  ;;  %v2997_v53 = vld [vmem:[%s4487_s1 + $0x2d4] sm:$0xf0]  ;;  %v2322_v55 = vld [vmem:[%s4487_s1 + $0x258] sm:$0xf0]  ;;  %v2996_v56 = vld [vmem:[%s4487_s1 + $0x2d4] sm:$0xf]  ;;  %v2321_v58 = vor.u32 %v2981_v50, %v2320_v49 }
  0x3f   : > { %761 = vmatpush.bf16.msrb.mxu1 %v2193_v34  ;;  %775 = vmatpush.bf16.msrb.mxu2 %v2133_v35  ;;  %v2328_v34 = vld [vmem:[%s4487_s1 + $0x260] sm:$0xf]  ;;  %v2983_v35 = vld [vmem:[%s4487_s1 + $0x264] sm:$0xf0]  ;;  %v2386_v57 = vld [vmem:[%s4487_s1 + $0x2d8] sm:$0xf0]  ;;  %v2325_v60 = vor.u32 %v2980_v54, %v2322_v55 }
  0x40   : > { %789 = vmatpush.bf16.msrb.mxu3 %v2197_v39  ;;  %v2999_v39 = vld [vmem:[%s4487_s1 + $0x2e4] sm:$0xf0]  ;;  %v2312_v61 = vld [vmem:[%s4487_s1 + $0x240] sm:$0xf]  ;;  %v2389_v0 = vor.u32 %v2996_v56, %v2386_v57  ;;  %v2314_v3 = vld [vmem:[%s4487_s1 + $0x248] sm:$0xf0] }
  0x41   : > { %v2376_v63 = vld [vmem:[%s4487_s1 + $0x2c0] sm:$0xf]  ;;  %v2994_v4 = vld [vmem:[%s4487_s1 + $0x2c4] sm:$0xf]  ;;  %v2378_v5 = vld [vmem:[%s4487_s1 + $0x2c8] sm:$0xf0] }
  0x42   : > { %748 = vmatpush.bf16.msrb.mxu0 %v2121_v45  ;;  %v2394_v45 = vld [vmem:[%s4487_s1 + $0x2e8] sm:$0xf0]  ;;  %v2304_v12 = vld [vmem:[%s4487_s1 + $0x230] sm:$0xf]  ;;  %v2977_v14 = vld [vmem:[%s4487_s1 + $0x234] sm:$0xf0]  ;;  %v2381_v16 = vor.u32 %v2994_v4, %v2378_v5 }
  0x43   : > { %762 = vmatpush.bf16.msrb.mxu1 %v2185_v46  ;;  %776 = vmatpush.bf16.msrb.mxu2 %v2125_v47  ;;  %v2329_v46 = vor.u32 %v2983_v35, %v2328_v34  ;;  %v2393_v47 = vor.u32 %v2999_v39, %v2392_v36  ;;  %v2397_v52 = vor.u32 %v2998_v44, %v2394_v45  ;;  %v2368_v15 = vld [vmem:[%s4487_s1 + $0x2b0] sm:$0xf]  ;;  %v2976_v18 = vld [vmem:[%s4487_s1 + $0x234] sm:$0xf]  ;;  %v2306_v19 = vld [vmem:[%s4487_s1 + $0x238] sm:$0xf0] }
  0x44   : > { %790 = vmatpush.bf16.msrb.mxu3 %v2189_v51  ;;  %v2384_v51 = vld [vmem:[%s4487_s1 + $0x2d0] sm:$0xf]  ;;  %v2992_v20 = vld [vmem:[%s4487_s1 + $0x2b4] sm:$0xf]  ;;  %v2309_v24 = vor.u32 %v2976_v18, %v2306_v19  ;;  %v2296_v25 = vld [vmem:[%s4487_s1 + $0x220] sm:$0xf] }
  0x45   : > { %v2385_v59 = vor.u32 %v2997_v53, %v2384_v51  ;;  %v2975_v26 = vld [vmem:[%s4487_s1 + $0x224] sm:$0xf0]  ;;  %v2974_v31 = vld [vmem:[%s4487_s1 + $0x224] sm:$0xf]  ;;  %v2362_v34 = vld [vmem:[%s4487_s1 + $0x2a8] sm:$0xf0] }
  0x46   : > { %749 = vmatpush.bf16.msrb.mxu0 %v2113_v62  ;;  %v2979_v62 = vld [vmem:[%s4487_s1 + $0x244] sm:$0xf0]  ;;  %v2297_v35 = vor.u32 %v2975_v26, %v2296_v25  ;;  %v2288_v36 = vld [vmem:[%s4487_s1 + $0x210] sm:$0xf]  ;;  %v2973_v39 = vld [vmem:[%s4487_s1 + $0x214] sm:$0xf0] }
  0x47   : > { %763 = vmatpush.bf16.msrb.mxu1 %v2177_v1  ;;  %777 = vmatpush.bf16.msrb.mxu2 %v2117_v2  ;;  %v2995_v1 = vld [vmem:[%s4487_s1 + $0x2c4] sm:$0xf0]  ;;  %v2978_v2 = vld [vmem:[%s4487_s1 + $0x244] sm:$0xf]  ;;  %v2352_v40 = vld [vmem:[%s4487_s1 + $0x290] sm:$0xf]  ;;  %v2289_v51 = vor.u32 %v2973_v39, %v2288_v36 }
  0x48   : > { %791 = vmatpush.bf16.msrb.mxu3 %v2181_v6  ;;  %v2313_v6 = vor.u32 %v2979_v62, %v2312_v61  ;;  %v2377_v10 = vor.u32 %v2995_v1, %v2376_v63  ;;  %v2317_v11 = vor.u32 %v2978_v2, %v2314_v3  ;;  %v2991_v30 = vld [vmem:[%s4487_s1 + $0x2a4] sm:$0xf0]  ;;  %v231_v41 = vadd.s32 8, %v3496_v29  ;;  %v2989_v44 = vld [vmem:[%s4487_s1 + $0x294] sm:$0xf0] }
  0x49   : > { %v2972_v45 = vld [vmem:[%s4487_s1 + $0x214] sm:$0xf]  ;;  %v2354_v29 = vld [vmem:[%s4487_s1 + $0x298] sm:$0xf0]  ;;  %v283_v49 = vrot.slane %v3454_v8, 1  ;;  %v286_v50 = vrot.slane %v3466_v13, 1  ;;  %v2353_v54 = vor.u32 %v2989_v44, %v2352_v40 }
  0x4a   : > { %750 = vmatpush.bf16.msrb.mxu0 %v2105_v17  ;;  %v2993_v17 = vld [vmem:[%s4487_s1 + $0x2b4] sm:$0xf0]  ;;  %v285_v53 = vrot.slane %v3457_v9, 1  ;;  %v2344_v8 = vld [vmem:[%s4487_s1 + $0x280] sm:$0xf]  ;;  %v243_v13 = vand.u32 15, %v231_v41 }
  0x4b   : > { %764 = vmatpush.bf16.msrb.mxu1 %v2169_v21  ;;  %778 = vmatpush.bf16.msrb.mxu2 %v2109_v22  ;;  %v2370_v21 = vld [vmem:[%s4487_s1 + $0x2b8] sm:$0xf0]  ;;  %v2305_v22 = vor.u32 %v2977_v14, %v2304_v12  ;;  %v2369_v23 = vor.u32 %v2993_v17, %v2368_v15  ;;  %v2987_v57 = vld [vmem:[%s4487_s1 + $0x284] sm:$0xf0]  ;;  %v2970_v9 = vld [vmem:[%s4487_s1 + $0x204] sm:$0xf] }
  0x4c   : > { %792 = vmatpush.bf16.msrb.mxu3 %v2173_v27  ;;  %v2360_v27 = vld [vmem:[%s4487_s1 + $0x2a0] sm:$0xf]  ;;  %v292_v61 = vsel %vm281_vm4, %v283_v49, 0.0  ;;  %v293_v62 = vsel %vm281_vm4, %v286_v50, 0.0  ;;  %v2345_v1 = vor.u32 %v2987_v57, %v2344_v8  ;;  %vm3099_vm5 = vcmp.ne.s32.totalorder %v243_v13, 15 }
  0x4d   : > { %2233 = vmatmul.msk.bf16.vlgmr.msrb.gmra.mxu0 %vm3634_vm3, %v2232_v38  ;;  %v287_v3 = vsel %vm281_vm4, %v285_v53, %v286_v50  ;;  %vm3806_vm6 = vmpackc.low %vm3099_vm5, %vm3121_vm2  ;;  %v3049_v12 = vld [vmem:[%s4489_s3 + $0x174] sm:$0xf0]  ;;  %v3048_v14 = vld [vmem:[%s4489_s3 + $0x174] sm:$0xf] }
  0x4e   : > { %994 = vmatpush.bf16.msra.mxu0 %v2337_v28  ;;  %2241 = vmatmul.msk.bf16.vlgmr.msrb.gmra.mxu2 %vm3634_vm3, %v2232_v38  ;;  %v2373_v28 = vor.u32 %v2992_v20, %v2370_v21  ;;  %v2504_v18 = vld [vmem:[%s4489_s3 + $0x160] sm:$0xf]  ;;  %v3047_v19 = vld [vmem:[%s4489_s3 + $0x164] sm:$0xf0]  ;;  %v3046_v20 = vld [vmem:[%s4489_s3 + $0x164] sm:$0xf] }
  0x4f   : > { %1008 = vmatpush.bf16.msra.mxu1 %v2401_v32  ;;  %1022 = vmatpush.bf16.msra.mxu2 %v2341_v33  ;;  %v2298_v32 = vld [vmem:[%s4487_s1 + $0x228] sm:$0xf0]  ;;  %v2990_v33 = vld [vmem:[%s4487_s1 + $0x2a4] sm:$0xf]  ;;  %v2505_v21 = vor.u32 %v3047_v19, %v2504_v18  ;;  %v2488_v44 = vld [vmem:[%s4489_s3 + $0x140] sm:$0xf] }
  0x50   : > { %1036 = vmatpush.bf16.msra.mxu3 %v2405_v37  ;;  %2237 = vmatmul.msk.bf16.vlgmr.msrb.gmra.mxu1 %vm3634_vm3, %v2236_v43  ;;  %v2361_v37 = vor.u32 %v2991_v30, %v2360_v27  ;;  %v2301_v38 = vor.u32 %v2974_v31, %v2298_v32  ;;  %v3064_v27 = vld [vmem:[%s4489_s3 + $0x1f4] sm:$0xf]  ;;  %v2496_v31 = vld [vmem:[%s4489_s3 + $0x150] sm:$0xf]  ;;  %v3045_v32 = vld [vmem:[%s4489_s3 + $0x154] sm:$0xf0] }
  0x51   : > { %2245 = vmatmul.msk.bf16.vlgmr.msrb.gmra.mxu3 %vm3634_vm3, %v2236_v43  ;;  %v2365_v43 = vor.u32 %v2990_v33, %v2362_v34  ;;  %v3044_v33 = vld [vmem:[%s4489_s3 + $0x154] sm:$0xf]  ;;  %v2497_v34 = vor.u32 %v3045_v32, %v2496_v31  ;;  %v3062_v39 = vld [vmem:[%s4489_s3 + $0x1e4] sm:$0xf]  ;;  %v2570_v41 = vld [vmem:[%s4489_s3 + $0x1e8] sm:$0xf0] }
  0x52   : > { %995 = vmatpush.bf16.msra.mxu0 %v2329_v46  ;;  %v2290_v46 = vld [vmem:[%s4487_s1 + $0x218] sm:$0xf0]  ;;  %v3040_v8 = vld [vmem:[%s4489_s3 + $0x134] sm:$0xf]  ;;  %v3034_v31 = vld [vmem:[%s4489_s3 + $0x104] sm:$0xf] }
  0x53   : > { %1009 = vmatpush.bf16.msra.mxu1 %v2393_v47  ;;  %1023 = vmatpush.bf16.msra.mxu2 %v2333_v48  ;;  %v2988_v47 = vld [vmem:[%s4487_s1 + $0x294] sm:$0xf]  ;;  %v282_v48 = vrot.slane %v3451_v7, 1  ;;  %v2293_v55 = vor.u32 %v2972_v45, %v2290_v46  ;;  %v2971_v7 = vld [vmem:[%s4487_s1 + $0x204] sm:$0xf0] }
  0x54   : > { %1037 = vmatpush.bf16.msra.mxu3 %v2397_v52  ;;  %v2280_v52 = vld [vmem:[%s4487_s1 + $0x200] sm:$0xf]  ;;  %v2357_v56 = vor.u32 %v2988_v47, %v2354_v29  ;;  %v3043_v45 = vld [vmem:[%s4489_s3 + $0x144] sm:$0xf0]  ;;  %v3042_v46 = vld [vmem:[%s4489_s3 + $0x144] sm:$0xf] }
  0x55   : > { %v2281_v63 = vor.u32 %v2971_v7, %v2280_v52  ;;  %v2489_v47 = vor.u32 %v3043_v45, %v2488_v44  ;;  %v2490_v29 = vld [vmem:[%s4489_s3 + $0x148] sm:$0xf0]  ;;  %v3060_v52 = vld [vmem:[%s4489_s3 + $0x1d4] sm:$0xf]  ;;  %v2562_v53 = vld [vmem:[%s4489_s3 + $0x1d8] sm:$0xf0] }
  0x56   : > { %996 = vmatpush.bf16.msra.mxu0 %v2321_v58  ;;  %v2282_v58 = vld [vmem:[%s4487_s1 + $0x208] sm:$0xf0]  ;;  %v2493_v50 = vor.u32 %v3042_v46, %v2490_v29  ;;  %v3041_v7 = vld [vmem:[%s4489_s3 + $0x134] sm:$0xf0]  ;;  %v3036_v18 = vld [vmem:[%s4489_s3 + $0x114] sm:$0xf] }
  0x57   : > { %1010 = vmatpush.bf16.msra.mxu1 %v2385_v59  ;;  %1024 = vmatpush.bf16.msra.mxu2 %v2325_v60  ;;  %v2986_v59 = vld [vmem:[%s4487_s1 + $0x284] sm:$0xf]  ;;  %v2346_v60 = vld [vmem:[%s4487_s1 + $0x288] sm:$0xf0]  ;;  %v2285_v2 = vor.u32 %v2970_v9, %v2282_v58  ;;  %v2552_v9 = vld [vmem:[%s4489_s3 + $0x1c0] sm:$0xf] }
  0x58   : > { %1038 = vmatpush.bf16.msra.mxu3 %v2389_v0  ;;  %v284_v0 = vsel %vm281_vm4, %v282_v48, %v283_v49  ;;  %v2349_v4 = vor.u32 %v2986_v59, %v2346_v60  ;;  %v2560_v48 = vld [vmem:[%s4489_s3 + $0x1d0] sm:$0xf]  ;;  %v3061_v49 = vld [vmem:[%s4489_s3 + $0x1d4] sm:$0xf0]  ;;  %v3059_v58 = vld [vmem:[%s4489_s3 + $0x1c4] sm:$0xf0] }
  0x59   : > { %v2408_v5 = vpack.c.bf16 %v292_v61, %v284_v0  ;;  %v3058_v59 = vld [vmem:[%s4489_s3 + $0x1c4] sm:$0xf]  ;;  %v2553_v60 = vor.u32 %v3059_v58, %v2552_v9  ;;  %v2554_v61 = vld [vmem:[%s4489_s3 + $0x1c8] sm:$0xf0]  ;;  %v3039_v0 = vld [vmem:[%s4489_s3 + $0x124] sm:$0xf0] }
  0x5a   : > { %997 = vmatpush.bf16.msra.mxu0 %v2313_v6  ;;  %v3052_v44 = vld [vmem:[%s4489_s3 + $0x194] sm:$0xf]  ;;  %v2530_v45 = vld [vmem:[%s4489_s3 + $0x198] sm:$0xf0]  ;;  %v2632_v29 = vld [vmem:[%s4489_s3 + $0x60] sm:$0xf] }
  0x5b   : > { %1011 = vmatpush.bf16.msra.mxu1 %v2377_v10  ;;  %1025 = vmatpush.bf16.msra.mxu2 %v2317_v11  ;;  %v2412_v10 = vpack.c.bf16 %v293_v62, %v287_v3  ;;  %v2512_v11 = vld [vmem:[%s4489_s3 + $0x170] sm:$0xf]  ;;  %v2557_v62 = vor.u32 %v3058_v59, %v2554_v61  ;;  %v2474_v3 = vld [vmem:[%s4489_s3 + $0x128] sm:$0xf0]  ;;  %v3033_v58 = vld [vmem:[%s4489_s3 + $0xf4] sm:$0xf0] }
  0x5c   : > { %1039 = vmatpush.bf16.msra.mxu3 %v2381_v16  ;;  %v2513_v15 = vor.u32 %v3049_v12, %v2512_v11  ;;  %v2514_v16 = vld [vmem:[%s4489_s3 + $0x178] sm:$0xf0]  ;;  %v3056_v12 = vld [vmem:[%s4489_s3 + $0x1b4] sm:$0xf]  ;;  %v2832_v42 = vld [vmem:[%s4489_s3 + $0x290] sm:$0xf] }
  0x5d   : > { %v2517_v17 = vor.u32 %v3048_v14, %v2514_v16  ;;  %v2546_v14 = vld [vmem:[%s4489_s3 + $0x1b8] sm:$0xf0]  ;;  %v2464_v16 = vld [vmem:[%s4489_s3 + $0x110] sm:$0xf]  ;;  %v3032_v59 = vld [vmem:[%s4489_s3 + $0xf4] sm:$0xf] }
  0x5e   : > { %998 = vmatpush.bf16.msra.mxu0 %v2305_v22  ;;  %v2506_v22 = vld [vmem:[%s4489_s3 + $0x168] sm:$0xf0] }
  0x5f   : > { %1012 = vmatpush.bf16.msra.mxu1 %v2369_v23  ;;  %1026 = vmatpush.bf16.msra.mxu2 %v2309_v24  ;;  %v2576_v23 = vld [vmem:[%s4489_s3 + $0x1f0] sm:$0xf]  ;;  %v3065_v24 = vld [vmem:[%s4489_s3 + $0x1f4] sm:$0xf0]  ;;  %v2509_v25 = vor.u32 %v3046_v20, %v2506_v22  ;;  %v2466_v20 = vld [vmem:[%s4489_s3 + $0x118] sm:$0xf0] }
  0x60   : > { %1040 = vmatpush.bf16.msra.mxu3 %v2373_v28  ;;  %v2577_v26 = vor.u32 %v3065_v24, %v2576_v23  ;;  %v2578_v28 = vld [vmem:[%s4489_s3 + $0x1f8] sm:$0xf0]  ;;  %v2536_v22 = vld [vmem:[%s4489_s3 + $0x1a0] sm:$0xf]  ;;  %v3055_v23 = vld [vmem:[%s4489_s3 + $0x1a4] sm:$0xf0] }
  0x61   : > { %v2581_v30 = vor.u32 %v3064_v27, %v2578_v28  ;;  %v3054_v24 = vld [vmem:[%s4489_s3 + $0x1a4] sm:$0xf]  ;;  %v2456_v28 = vld [vmem:[%s4489_s3 + $0x100] sm:$0xf] }
  0x62   : > { %999 = vmatpush.bf16.msra.mxu0 %v2297_v35  ;;  %v2498_v35 = vld [vmem:[%s4489_s3 + $0x158] sm:$0xf0] }
  0x63   : > { %1013 = vmatpush.bf16.msra.mxu1 %v2361_v37  ;;  %1027 = vmatpush.bf16.msra.mxu2 %v2301_v38  ;;  %v2501_v36 = vor.u32 %v3044_v33, %v2498_v35  ;;  %v2568_v37 = vld [vmem:[%s4489_s3 + $0x1e0] sm:$0xf]  ;;  %v3063_v38 = vld [vmem:[%s4489_s3 + $0x1e4] sm:$0xf0]  ;;  %v2458_v33 = vld [vmem:[%s4489_s3 + $0x108] sm:$0xf0] }
  0x64   : > { %1041 = vmatpush.bf16.msra.mxu3 %v2365_v43  ;;  %v2569_v40 = vor.u32 %v3063_v38, %v2568_v37  ;;  %v2573_v43 = vor.u32 %v3062_v39, %v2570_v41  ;;  %v3017_v35 = vld [vmem:[%s4489_s3 + $0x74] sm:$0xf0]  ;;  %v3016_v38 = vld [vmem:[%s4489_s3 + $0x74] sm:$0xf]  ;;  %v2642_v39 = vld [vmem:[%s4489_s3 + $0x78] sm:$0xf0] }
  0x65   : > { %v2645_v41 = vor.u32 %v3016_v38, %v2642_v39  ;;  %v2680_v39 = vld [vmem:[%s4489_s3 + $0xc0] sm:$0xf] }
  0x66   : > { %1000 = vmatpush.bf16.msra.mxu0 %v2289_v51  ;;  %v2561_v51 = vor.u32 %v3061_v49, %v2560_v48  ;;  %v3015_v48 = vld [vmem:[%s4489_s3 + $0x64] sm:$0xf0]  ;;  %v3014_v49 = vld [vmem:[%s4489_s3 + $0x64] sm:$0xf] }
  0x67   : > { %1014 = vmatpush.bf16.msra.mxu1 %v2353_v54  ;;  %1028 = vmatpush.bf16.msra.mxu2 %v2293_v55  ;;  %v2565_v54 = vor.u32 %v3060_v52, %v2562_v53  ;;  %v2480_v55 = vld [vmem:[%s4489_s3 + $0x130] sm:$0xf]  ;;  %v2634_v52 = vld [vmem:[%s4489_s3 + $0x68] sm:$0xf0]  ;;  %v2520_v53 = vld [vmem:[%s4489_s3 + $0x180] sm:$0xf] }
  0x68   : > { %1042 = vmatpush.bf16.msra.mxu3 %v2357_v56  ;;  %v2481_v13 = vor.u32 %v3041_v7, %v2480_v55  ;;  %v2482_v56 = vld [vmem:[%s4489_s3 + $0x138] sm:$0xf0]  ;;  %v2637_v7 = vor.u32 %v3014_v49, %v2634_v52 }
  0x69   : > { %v2485_v57 = vor.u32 %v3040_v8, %v2482_v56  ;;  %v2522_v56 = vld [vmem:[%s4489_s3 + $0x188] sm:$0xf0] }
  0x6a   : > { %1001 = vmatpush.bf16.msra.mxu0 %v2281_v63  ;;  %v2472_v63 = vld [vmem:[%s4489_s3 + $0x120] sm:$0xf] }
  0x6b   : > { %1015 = vmatpush.bf16.msra.mxu1 %v2345_v1  ;;  %1029 = vmatpush.bf16.msra.mxu2 %v2285_v2  ;;  %v3038_v1 = vld [vmem:[%s4489_s3 + $0x124] sm:$0xf]  ;;  %v2473_v2 = vor.u32 %v3039_v0, %v2472_v63  ;;  %v2624_v63 = vld [vmem:[%s4489_s3 + $0x50] sm:$0xf]  ;;  %v3013_v0 = vld [vmem:[%s4489_s3 + $0x54] sm:$0xf0] }
  0x6c   : > { %1043 = vmatpush.bf16.msra.mxu3 %v2349_v4  ;;  %v2544_v4 = vld [vmem:[%s4489_s3 + $0x1b0] sm:$0xf] }
  0x6d   : > { %2409 = vmatmul.msk.bf16.vlgmr.msra.gmra.mxu0 %vm3806_vm6, %v2408_v5 }
  0x6e   : > { %2413 = vmatmul.msk.bf16.vlgmr.msra.gmra.mxu1 %vm3806_vm6, %v2412_v10  ;;  %2417 = vmatmul.msk.bf16.vlgmr.msra.gmra.mxu2 %vm3806_vm6, %v2408_v5  ;;  %v3057_v5 = vld [vmem:[%s4489_s3 + $0x1b4] sm:$0xf0] }
  0x6f   : > { %2421 = vmatmul.msk.bf16.vlgmr.msra.gmra.mxu3 %vm3806_vm6, %v2412_v10  ;;  %1333 = vmatpush.bf16.msrb.mxu0 %v2513_v15  ;;  %v2477_v10 = vor.u32 %v3038_v1, %v2474_v3  ;;  %v2545_v11 = vor.u32 %v3057_v5, %v2544_v4  ;;  %v2549_v15 = vor.u32 %v3056_v12, %v2546_v14  ;;  %v3012_v1 = vld [vmem:[%s4489_s3 + $0x54] sm:$0xf]  ;;  %v2626_v3 = vld [vmem:[%s4489_s3 + $0x58] sm:$0xf0]  ;;  %v2696_v5 = vld [vmem:[%s4489_s3 + $0xe0] sm:$0xf] }
  0x70   : > { %1361 = vmatpush.bf16.msrb.mxu2 %v2517_v17  ;;  %1347 = vmatpush.bf16.msrb.mxu1 %v2577_v26  ;;  %v3037_v17 = vld [vmem:[%s4489_s3 + $0x114] sm:$0xf0]  ;;  %v2538_v26 = vld [vmem:[%s4489_s3 + $0x1a8] sm:$0xf0]  ;;  %v2629_v4 = vor.u32 %v3012_v1, %v2626_v3  ;;  %v2664_v1 = vld [vmem:[%s4489_s3 + $0xa0] sm:$0xf] }
  0x71   : > { %1375 = vmatpush.bf16.msrb.mxu3 %v2581_v30  ;;  %v2465_v19 = vor.u32 %v3037_v17, %v2464_v16  ;;  %v2541_v27 = vor.u32 %v3054_v24, %v2538_v26  ;;  %v3035_v30 = vld [vmem:[%s4489_s3 + $0x104] sm:$0xf0]  ;;  %v3029_v26 = vld [vmem:[%s4489_s3 + $0xd4] sm:$0xf0]  ;;  %v3022_v3 = vld [vmem:[%s4489_s3 + $0xa4] sm:$0xf] }
  0x72   : > { %v2457_v32 = vor.u32 %v3035_v30, %v2456_v28  ;;  %v3028_v30 = vld [vmem:[%s4489_s3 + $0xd4] sm:$0xf] }
  0x73   : > { %1334 = vmatpush.bf16.msrb.mxu0 %v2505_v21  ;;  %v2469_v21 = vor.u32 %v3036_v18, %v2466_v20  ;;  %v2616_v18 = vld [vmem:[%s4489_s3 + $0x40] sm:$0xf]  ;;  %v3010_v20 = vld [vmem:[%s4489_s3 + $0x44] sm:$0xf] }
  0x74   : > { %1362 = vmatpush.bf16.msrb.mxu2 %v2509_v25  ;;  %1348 = vmatpush.bf16.msrb.mxu1 %v2569_v40  ;;  %v2537_v25 = vor.u32 %v3055_v23, %v2536_v22  ;;  %v2528_v40 = vld [vmem:[%s4489_s3 + $0x190] sm:$0xf]  ;;  %v2618_v22 = vld [vmem:[%s4489_s3 + $0x48] sm:$0xf0] }
  0x75   : > { %1376 = vmatpush.bf16.msrb.mxu3 %v2573_v43  ;;  %v3053_v43 = vld [vmem:[%s4489_s3 + $0x194] sm:$0xf0]  ;;  %v2621_v24 = vor.u32 %v3010_v20, %v2618_v22  ;;  %v2656_v20 = vld [vmem:[%s4489_s3 + $0x90] sm:$0xf] }
  0x76   : > { %v2529_v46 = vor.u32 %v3053_v43, %v2528_v40  ;;  %v3027_v40 = vld [vmem:[%s4489_s3 + $0xc4] sm:$0xf0]  ;;  %v3021_v22 = vld [vmem:[%s4489_s3 + $0x94] sm:$0xf0] }
  0x77   : > { %1335 = vmatpush.bf16.msrb.mxu0 %v2497_v34  ;;  %v2640_v34 = vld [vmem:[%s4489_s3 + $0x70] sm:$0xf]  ;;  %v2681_v43 = vor.u32 %v3027_v40, %v2680_v39 }
  0x78   : > { %1363 = vmatpush.bf16.msrb.mxu2 %v2501_v36  ;;  %1349 = vmatpush.bf16.msrb.mxu1 %v2561_v51  ;;  %v2461_v36 = vor.u32 %v3034_v31, %v2458_v33  ;;  %v2641_v37 = vor.u32 %v3017_v35, %v2640_v34  ;;  %v2633_v51 = vor.u32 %v3015_v48, %v2632_v29  ;;  %v2690_v31 = vld [vmem:[%s4489_s3 + $0xd8] sm:$0xf0]  ;;  %v2608_v33 = vld [vmem:[%s4489_s3 + $0x30] sm:$0xf]  ;;  %v3009_v34 = vld [vmem:[%s4489_s3 + $0x34] sm:$0xf0] }
  0x79   : > { %1377 = vmatpush.bf16.msrb.mxu3 %v2565_v54  ;;  %v3051_v54 = vld [vmem:[%s4489_s3 + $0x184] sm:$0xf0]  ;;  %v3008_v35 = vld [vmem:[%s4489_s3 + $0x34] sm:$0xf]  ;;  %v3006_v29 = vld [vmem:[%s4489_s3 + $0x24] sm:$0xf] }
  0x7a   : > { %v2521_v8 = vor.u32 %v3051_v54, %v2520_v53  ;;  %v2672_v54 = vld [vmem:[%s4489_s3 + $0xb0] sm:$0xf] }
  0x7b   : > { %1336 = vmatpush.bf16.msrb.mxu0 %v2489_v47  ;;  %v2533_v47 = vor.u32 %v3052_v44, %v2530_v45  ;;  %v2682_v44 = vld [vmem:[%s4489_s3 + $0xc8] sm:$0xf0] }
  0x7c   : > { %1364 = vmatpush.bf16.msrb.mxu2 %v2493_v50  ;;  %1350 = vmatpush.bf16.msrb.mxu1 %v2553_v60  ;;  %v2706_v60 = vld [vmem:[%s4489_s3 + $0xf8] sm:$0xf0] }
  0x7d   : > { %1378 = vmatpush.bf16.msrb.mxu3 %v2557_v62  ;;  %v2709_v62 = vor.u32 %v3032_v59, %v2706_v60  ;;  %v3005_v59 = vld [vmem:[%s4489_s3 + $0x14] sm:$0xf0]  ;;  %v3004_v60 = vld [vmem:[%s4489_s3 + $0x14] sm:$0xf] }
  0x7f   : > { %1337 = vmatpush.bf16.msrb.mxu0 %v2481_v13  ;;  %v3050_v13 = vld [vmem:[%s4489_s3 + $0x184] sm:$0xf] }
  0x80   : > { %1365 = vmatpush.bf16.msrb.mxu2 %v2485_v57  ;;  %1351 = vmatpush.bf16.msrb.mxu1 %v2545_v11  ;;  %v2704_v57 = vld [vmem:[%s4489_s3 + $0xf0] sm:$0xf]  ;;  %v2525_v9 = vor.u32 %v3050_v13, %v2522_v56  ;;  %v3030_v11 = vld [vmem:[%s4489_s3 + $0xe4] sm:$0xf]  ;;  %v2674_v56 = vld [vmem:[%s4489_s3 + $0xb8] sm:$0xf0] }
  0x81   : > { %1379 = vmatpush.bf16.msrb.mxu3 %v2549_v15  ;;  %v2705_v61 = vor.u32 %v3033_v58, %v2704_v57  ;;  %v2698_v15 = vld [vmem:[%s4489_s3 + $0xe8] sm:$0xf0]  ;;  %v2592_v58 = vld [vmem:[%s4489_s3 + $0x10] sm:$0xf] }
  0x82   : > { %v2701_v17 = vor.u32 %v3030_v11, %v2698_v15  ;;  %v2584_v11 = vld [vmem:[%s4489_s3] sm:$0xf]  ;;  %v3002_v15 = vld [vmem:[%s4489_s3 + $0x4] sm:$0xf] }
  0x83   : > { %1338 = vmatpush.bf16.msrb.mxu0 %v2473_v2  ;;  %v2625_v2 = vor.u32 %v3013_v0, %v2624_v63  ;;  %v2594_v63 = vld [vmem:[%s4489_s3 + $0x18] sm:$0xf0] }
  0x84   : > { %1366 = vmatpush.bf16.msrb.mxu2 %v2477_v10  ;;  %1352 = vmatpush.bf16.msrb.mxu1 %v2537_v25  ;;  %v3031_v10 = vld [vmem:[%s4489_s3 + $0xe4] sm:$0xf0]  ;;  %v2688_v25 = vld [vmem:[%s4489_s3 + $0xd0] sm:$0xf]  ;;  %v2597_v0 = vor.u32 %v3004_v60, %v2594_v63  ;;  %v3080_v63 = vld [vmem:[%s4489_s3 + $0x274] sm:$0xf] }
  0x85   : > { %1380 = vmatpush.bf16.msrb.mxu3 %v2541_v27  ;;  %v2697_v14 = vor.u32 %v3031_v10, %v2696_v5  ;;  %v2689_v28 = vor.u32 %v3029_v26, %v2688_v25  ;;  %v2666_v5 = vld [vmem:[%s4489_s3 + $0xa8] sm:$0xf0]  ;;  %v2658_v25 = vld [vmem:[%s4489_s3 + $0x98] sm:$0xf0]  ;;  %v2816_v60 = vld [vmem:[%s4489_s3 + $0x270] sm:$0xf] }
  0x86   : > { %v2669_v10 = vor.u32 %v3022_v3, %v2666_v5 }
  0x87   : > { %1339 = vmatpush.bf16.msrb.mxu0 %v2465_v19  ;;  %v3011_v19 = vld [vmem:[%s4489_s3 + $0x44] sm:$0xf0] }
  0x88   : > { %1367 = vmatpush.bf16.msrb.mxu2 %v2469_v21  ;;  %1353 = vmatpush.bf16.msrb.mxu1 %v2529_v46  ;;  %v2617_v21 = vor.u32 %v3011_v19, %v2616_v18  ;;  %v2600_v46 = vld [vmem:[%s4489_s3 + $0x20] sm:$0xf]  ;;  %v2586_v18 = vld [vmem:[%s4489_s3 + $0x8] sm:$0xf0] }
  0x89   : > { %1381 = vmatpush.bf16.msrb.mxu3 %v2533_v47  ;;  %v3007_v47 = vld [vmem:[%s4489_s3 + $0x24] sm:$0xf0]  ;;  %v2589_v19 = vor.u32 %v3002_v15, %v2586_v18  ;;  %v2808_v15 = vld [vmem:[%s4489_s3 + $0x260] sm:$0xf] }
  0x8a   : > { %v2601_v49 = vor.u32 %v3007_v47, %v2600_v46  ;;  %v3079_v18 = vld [vmem:[%s4489_s3 + $0x264] sm:$0xf0] }
  0x8b   : > { %1340 = vmatpush.bf16.msrb.mxu0 %v2457_v32  ;;  %v2693_v32 = vor.u32 %v3028_v30, %v2690_v31 }
  0x8c   : > { %1368 = vmatpush.bf16.msrb.mxu2 %v2461_v36  ;;  %1354 = vmatpush.bf16.msrb.mxu1 %v2521_v8  ;;  %v2609_v36 = vor.u32 %v3009_v34, %v2608_v33  ;;  %v3024_v8 = vld [vmem:[%s4489_s3 + $0xb4] sm:$0xf]  ;;  %v3019_v33 = vld [vmem:[%s4489_s3 + $0x84] sm:$0xf0] }
  0x8d   : > { %1382 = vmatpush.bf16.msrb.mxu3 %v2525_v9  ;;  %v2677_v9 = vor.u32 %v3024_v8, %v2674_v56 }
  0x8f   : > { %1549 = vmatpush.bf16.msra.mxu0 %v2641_v37  ;;  %v2610_v37 = vld [vmem:[%s4489_s3 + $0x38] sm:$0xf0] }
  0x90   : > { %1577 = vmatpush.bf16.msra.mxu2 %v2645_v41  ;;  %1563 = vmatpush.bf16.msra.mxu1 %v2705_v61  ;;  %v2613_v38 = vor.u32 %v3008_v35, %v2610_v37  ;;  %v3026_v41 = vld [vmem:[%s4489_s3 + $0xc4] sm:$0xf]  ;;  %v2650_v37 = vld [vmem:[%s4489_s3 + $0x88] sm:$0xf0] }
  0x91   : > { %1591 = vmatpush.bf16.msra.mxu3 %v2709_v62  ;;  %v2685_v45 = vor.u32 %v3026_v41, %v2682_v44  ;;  %v2593_v62 = vor.u32 %v3005_v59, %v2592_v58 }
  0x93   : > { %1550 = vmatpush.bf16.msra.mxu0 %v2633_v51  ;;  %v2602_v51 = vld [vmem:[%s4489_s3 + $0x28] sm:$0xf0] }
  0x94   : > { %1578 = vmatpush.bf16.msra.mxu2 %v2637_v7  ;;  %1564 = vmatpush.bf16.msra.mxu1 %v2697_v14  ;;  %v2605_v53 = vor.u32 %v3006_v29, %v2602_v51  ;;  %v3025_v7 = vld [vmem:[%s4489_s3 + $0xb4] sm:$0xf0]  ;;  %v3003_v14 = vld [vmem:[%s4489_s3 + $0x4] sm:$0xf0] }
  0x95   : > { %1592 = vmatpush.bf16.msra.mxu3 %v2701_v17  ;;  %v2673_v13 = vor.u32 %v3025_v7, %v2672_v54  ;;  %v2585_v17 = vor.u32 %v3003_v14, %v2584_v11 }
  0x97   : > { %1551 = vmatpush.bf16.msra.mxu0 %v2625_v2  ;;  %v3023_v2 = vld [vmem:[%s4489_s3 + $0xa4] sm:$0xf0] }
  0x98   : > { %1579 = vmatpush.bf16.msra.mxu2 %v2629_v4  ;;  %1565 = vmatpush.bf16.msra.mxu1 %v2689_v28  ;;  %v2665_v4 = vor.u32 %v3023_v2, %v2664_v1  ;;  %v2657_v28 = vor.u32 %v3021_v22, %v2656_v20  ;;  %v2810_v20 = vld [vmem:[%s4489_s3 + $0x268] sm:$0xf0] }
  0x99   : > { %1593 = vmatpush.bf16.msra.mxu3 %v2693_v32  ;;  %v2648_v32 = vld [vmem:[%s4489_s3 + $0x80] sm:$0xf] }
  0x9a   : > { %v2649_v35 = vor.u32 %v3019_v33, %v2648_v32  ;;  %v2882_v32 = vld [vmem:[%s4489_s3 + $0x2f8] sm:$0xf0]  ;;  %v2800_v33 = vld [vmem:[%s4489_s3 + $0x250] sm:$0xf] }
  0x9b   : > { %1552 = vmatpush.bf16.msra.mxu0 %v2617_v21 }
  0x9c   : > { %1580 = vmatpush.bf16.msra.mxu2 %v2621_v24  ;;  %1566 = vmatpush.bf16.msra.mxu1 %v2681_v43  ;;  %v3020_v24 = vld [vmem:[%s4489_s3 + $0x94] sm:$0xf] }
  0x9d   : > { %1594 = vmatpush.bf16.msra.mxu3 %v2685_v45  ;;  %v2661_v30 = vor.u32 %v3020_v24, %v2658_v25  ;;  %v2880_v24 = vld [vmem:[%s4489_s3 + $0x2f0] sm:$0xf]  ;;  %v3097_v25 = vld [vmem:[%s4489_s3 + $0x2f4] sm:$0xf0] }
  0x9f   : > { %1553 = vmatpush.bf16.msra.mxu0 %v2609_v36  ;;  %v3018_v36 = vld [vmem:[%s4489_s3 + $0x84] sm:$0xf] }
  0xa0   : > { %1581 = vmatpush.bf16.msra.mxu2 %v2613_v38  ;;  %1567 = vmatpush.bf16.msra.mxu1 %v2673_v13  ;;  %v2653_v38 = vor.u32 %v3018_v36, %v2650_v37  ;;  %v2802_v36 = vld [vmem:[%s4489_s3 + $0x258] sm:$0xf0] }
  0xa1   : > { %1595 = vmatpush.bf16.msra.mxu3 %v2677_v9 }
  0xa3   : > { %1554 = vmatpush.bf16.msra.mxu0 %v2601_v49  ;;  %v1054_v49 = vld [vmem:[%s4488_s2] sm:$0x3] }
  0xa4   : > { %1582 = vmatpush.bf16.msra.mxu2 %v2605_v53  ;;  %1568 = vmatpush.bf16.msra.mxu1 %v2665_v4 }
  0xa5   : > { %1596 = vmatpush.bf16.msra.mxu3 %v2669_v10 }
  0xa7   : > { %1555 = vmatpush.bf16.msra.mxu0 %v2593_v62  ;;  %v3081_v62 = vld [vmem:[%s4489_s3 + $0x274] sm:$0xf0] }
  0xa8   : > { %1583 = vmatpush.bf16.msra.mxu2 %v2597_v0  ;;  %1569 = vmatpush.bf16.msra.mxu1 %v2657_v28  ;;  %v1057_v0 = vperm.slane %v1054_v49, 1  ;;  %v2817_v11 = vor.u32 %v3081_v62, %v2816_v60  ;;  %v2809_v28 = vor.u32 %v3079_v18, %v2808_v15  ;;  %v3071_v15 = vld [vmem:[%s4489_s3 + $0x224] sm:$0xf0]  ;;  %v2778_v18 = vld [vmem:[%s4489_s3 + $0x228] sm:$0xf0] }
  0xa9   : > { %1597 = vmatpush.bf16.msra.mxu3 %v2661_v30 }
  0xab   : > { %1556 = vmatpush.bf16.msra.mxu0 %v2585_v17 }
  0xac   : > { %1584 = vmatpush.bf16.msra.mxu2 %v2589_v19  ;;  %1570 = vmatpush.bf16.msra.mxu1 %v2649_v35  ;;  %v3078_v19 = vld [vmem:[%s4489_s3 + $0x264] sm:$0xf]  ;;  %v3076_v35 = vld [vmem:[%s4489_s3 + $0x254] sm:$0xf] }
  0xad   : > { %v4019_v50 = vpop.f32.mrf.mxu0  ;;  %1598 = vmatpush.bf16.msra.mxu3 %v2653_v38  ;;  %v2813_v30 = vor.u32 %v3078_v19, %v2810_v20 }
  0xae   : > { %v4030_v55 = vpop.f32.mrf.mxu1 }
  0xaf   : > { %v551_v39 = vadd.f32 %v4030_v55, %v4019_v50  ;;  %v1056_v55 = vperm.slane %v1054_v49, 0  ;;  %v2792_v49 = vld [vmem:[%s4489_s3 + $0x240] sm:$0xf] }
  0xb1   : > { %v4071_v12 = vpop.f32.mrf.mxu2 }
  0xb4   : > { %v4076_v16 = vpop.f32.mrf.mxu3 }
  0xb5   : > { %v4090_v23 = vpop.f32.mrf.mxu0  ;;  %v579_v29 = vadd.f32 %v4076_v16, %v4071_v12 }
  0xb6   : > { %v4098_v27 = vpop.f32.mrf.mxu1 }
  0xb7   : > { %v553_v46 = vadd.f32 %v4098_v27, %v4090_v23 }
  0xb9   : > { %v4139_v48 = vpop.f32.mrf.mxu2 }
  0xbc   : > { %v4144_v52 = vpop.f32.mrf.mxu3 }
  0xbd   : > { %v581_v23 = vadd.f32 %v4144_v52, %v4139_v48  ;;  %v2818_v48 = vld [vmem:[%s4489_s3 + $0x278] sm:$0xf0] }
  0xbe   : > { %v2821_v14 = vor.u32 %v3080_v63, %v2818_v48  ;;  %v2856_v63 = vld [vmem:[%s4489_s3 + $0x2c0] sm:$0xf]  ;;  %v3091_v48 = vld [vmem:[%s4489_s3 + $0x2c4] sm:$0xf0] }
  0xbf   : > { %v2857_v20 = vor.u32 %v3091_v48, %v2856_v63 }
  0xca   : > { %v752_v57 = vpop.f32.mrf.mxu0 }
  0xcb   : > { %v753_v45 = vadd.f32 %v752_v57, %v551_v39  ;;  %v2881_v39 = vor.u32 %v3097_v25, %v2880_v24  ;;  %v3089_v24 = vld [vmem:[%s4489_s3 + $0x2b4] sm:$0xf0]  ;;  %v3088_v25 = vld [vmem:[%s4489_s3 + $0x2b4] sm:$0xf] }
  0xcd   : > { %v766_v61 = vpop.f32.mrf.mxu1 }
  0xce   : > { %v767_v51 = vadd.f32 %v766_v61, %v753_v45 }
  0xd1   : > { %v780_v21 = vpop.f32.mrf.mxu2 }
  0xd2   : > { %v754_v31 = vpop.f32.mrf.mxu0  ;;  %v781_v13 = vadd.f32 %v780_v21, %v579_v29  ;;  %v2874_v29 = vld [vmem:[%s4489_s3 + $0x2e8] sm:$0xf0] }
  0xd3   : > { %v755_v53 = vadd.f32 %v754_v31, %v553_v46  ;;  %v3096_v31 = vld [vmem:[%s4489_s3 + $0x2f4] sm:$0xf]  ;;  %v2805_v46 = vor.u32 %v3076_v35, %v2802_v36  ;;  %v2770_v35 = vld [vmem:[%s4489_s3 + $0x218] sm:$0xf0] }
  0xd4   : > { %v794_v26 = vpop.f32.mrf.mxu3 }
  0xd5   : > { %v768_v34 = vpop.f32.mrf.mxu1  ;;  %v795_v58 = vadd.f32 %v794_v26, %v781_v13 }
  0xd6   : > { %v769_v57 = vadd.f32 %v768_v34, %v755_v53  ;;  %v3077_v34 = vld [vmem:[%s4489_s3 + $0x254] sm:$0xf0]  ;;  %v3074_v53 = vld [vmem:[%s4489_s3 + $0x244] sm:$0xf] }
  0xd7   : > { %v2801_v45 = vor.u32 %v3077_v34, %v2800_v33  ;;  %v3069_v33 = vld [vmem:[%s4489_s3 + $0x214] sm:$0xf0]  ;;  %v3068_v34 = vld [vmem:[%s4489_s3 + $0x214] sm:$0xf] }
  0xd9   : > { %v782_v40 = vpop.f32.mrf.mxu2 }
  0xda   : > { %v783_v59 = vadd.f32 %v782_v40, %v581_v23  ;;  %v2885_v40 = vor.u32 %v3096_v31, %v2882_v32  ;;  %v2866_v23 = vld [vmem:[%s4489_s3 + $0x2d8] sm:$0xf0]  ;;  %v2768_v32 = vld [vmem:[%s4489_s3 + $0x210] sm:$0xf] }
  0xdc   : > { %v796_v41 = vpop.f32.mrf.mxu3 }
  0xdd   : > { %v797_v5 = vadd.f32 %v796_v41, %v783_v59  ;;  %v2872_v41 = vld [vmem:[%s4489_s3 + $0x2e0] sm:$0xf]  ;;  %v2786_v59 = vld [vmem:[%s4489_s3 + $0x238] sm:$0xf0] }
  0xea   : > { %v1003_v43 = vpop.f32.mrf.mxu0 }
  0xeb   : > { %v1017_v44 = vpop.f32.mrf.mxu1 }
  0xec   : > { %v1018_v47 = vadd.f32 %v1017_v44, %v1003_v43  ;;  %v3095_v43 = vld [vmem:[%s4489_s3 + $0x2e4] sm:$0xf0] }
  0xee   : > { %v1050_v50 = vadd.f32 %v1018_v47, %v767_v51  ;;  %v3094_v47 = vld [vmem:[%s4489_s3 + $0x2e4] sm:$0xf]  ;;  %v3075_v51 = vld [vmem:[%s4489_s3 + $0x244] sm:$0xf0] }
  0xef   : > { %v2793_v13 = vor.u32 %v3075_v51, %v2792_v49  ;;  %v2760_v49 = vld [vmem:[%s4489_s3 + $0x200] sm:$0xf]  ;;  %v3067_v51 = vld [vmem:[%s4489_s3 + $0x204] sm:$0xf0] }
  0xf0   : > { %v1060_v12 = vadd.f32 %v1056_v55, %v1050_v50 }
  0xf1   : > { %v1031_v54 = vpop.f32.mrf.mxu2 }
  0xf2   : > { %v1045_v7 = vpop.f32.mrf.mxu3  ;;  %v1005_v8 = vpop.f32.mrf.mxu0  ;;  %v4241_v2 = vmax.f32 %v1060_v12, 0.0  ;;  %v2784_v12 = vld [vmem:[%s4489_s3 + $0x230] sm:$0xf] }
  0xf3   : > { %v1019_v56 = vpop.f32.mrf.mxu1  ;;  %v1046_v27 = vadd.f32 %v1045_v7, %v1031_v54  ;;  %v2794_v54 = vld [vmem:[%s4489_s3 + $0x248] sm:$0xf0]  ;;  %v2877_v7 = vor.u32 %v3094_v47, %v2874_v29  ;;  %v2769_v47 = vor.u32 %v3069_v33, %v2768_v32  ;;  %v2773_v29 = vor.u32 %v3068_v34, %v2770_v35 }
  0xf4   : > { %v1020_v9 = vadd.f32 %v1019_v56, %v1005_v8  ;;  %v2864_v8 = vld [vmem:[%s4489_s3 + $0x2d0] sm:$0xf]  ;;  %v2797_v56 = vor.u32 %v3074_v53, %v2794_v54  ;;  %v3066_v53 = vld [vmem:[%s4489_s3 + $0x204] sm:$0xf]  ;;  %v2762_v54 = vld [vmem:[%s4489_s3 + $0x208] sm:$0xf0] }
  0xf5   : > { %v1051_v52 = vadd.f32 %v1046_v27, %v795_v58  ;;  %v1072_v27 = vrot.slane %v4241_v2, 7  ;;  %v3072_v58 = vld [vmem:[%s4489_s3 + $0x234] sm:$0xf] }
  0xf6   : > { %v1052_v16 = vadd.f32 %v1020_v9, %v769_v57  ;;  %v3093_v57 = vld [vmem:[%s4489_s3 + $0x2d4] sm:$0xf0]  ;;  %v3092_v9 = vld [vmem:[%s4489_s3 + $0x2d4] sm:$0xf] }
  0xf7   : > { %v1061_v21 = vadd.f32 %v1057_v0, %v1051_v52  ;;  %v2865_v60 = vor.u32 %v3093_v57, %v2864_v8  ;;  %v3090_v52 = vld [vmem:[%s4489_s3 + $0x2c4] sm:$0xf]  ;;  %v3085_v8 = vld [vmem:[%s4489_s3 + $0x294] sm:$0xf0]  ;;  %v2761_v57 = vor.u32 %v3067_v51, %v2760_v49 }
  0xf8   : > { %v1062_v61 = vadd.f32 %v1056_v55, %v1052_v16  ;;  %v2873_v55 = vor.u32 %v3095_v43, %v2872_v41  ;;  %v3073_v16 = vld [vmem:[%s4489_s3 + $0x234] sm:$0xf0]  ;;  %v2840_v41 = vld [vmem:[%s4489_s3 + $0x2a0] sm:$0xf] }
  0xf9   : > { %v1033_v1 = vpop.f32.mrf.mxu2  ;;  %v4283_v37 = vmax.f32 %v1061_v21, 0.0  ;;  %v3109_v49 = vld [vmem:[%s3448_s23] sm:$0xff] }
  0xfa   : > { %v4243_v3 = vmax.f32 %v1062_v61, 0.0  ;;  %v1047_v4 = vpop.f32.mrf.mxu3  ;;  %v2869_v61 = vor.u32 %v3092_v9, %v2866_v23  ;;  %v2765_v9 = vor.u32 %v3066_v53, %v2762_v54 }
  0xfb   : > { %v1048_v10 = vadd.f32 %v1047_v4, %v1033_v1  ;;  %v1082_v1 = vsel %vm264_vm0, 0.0, %v1072_v27  ;;  %v1073_v19 = vrot.slane %v4283_v37, 7  ;;  %v1091_v63 = vrot.slane %v4283_v37, 1 }
  0xfc   : > { %v1138_v17 = vpack.c.bf16 %v4243_v3, %v4241_v2  ;;  %v1074_v50 = vrot.slane %v4243_v3, 7 }
  0xfd   : > { %v1053_v22 = vadd.f32 %v1048_v10, %v797_v5  ;;  %v2785_v5 = vor.u32 %v3073_v16, %v2784_v12  ;;  %v2789_v10 = vor.u32 %v3072_v58, %v2786_v59  ;;  %v1083_v36 = vsel %vm264_vm0, 0.0, %v1073_v19  ;;  %v2824_v58 = vld [vmem:[%s4489_s3 + $0x280] sm:$0xf]  ;;  %v3082_v59 = vld [vmem:[%s4489_s3 + $0x284] sm:$0xf] }
  0xfe   : > { %1341 = vmatmul.bf16.vlgmr.msrb.gmra.mxu0 %v1138_v17  ;;  %1369 = vmatmul.bf16.vlgmr.msrb.gmra.mxu2 %v1138_v17  ;;  %v1075_v62 = vsel %vm264_vm0, %v1072_v27, %v1074_v50  ;;  %v3070_v17 = vld [vmem:[%s4489_s3 + $0x224] sm:$0xf]  ;;  %v1089_v50 = vrot.slane %v4243_v3, 1  ;;  %v2834_v3 = vld [vmem:[%s4489_s3 + $0x298] sm:$0xf0]  ;;  %v2833_v27 = vor.u32 %v3085_v8, %v2832_v42 }
  0xff   : > { %v1063_v26 = vadd.f32 %v1057_v0, %v1053_v22  ;;  %1800 = vmatpush.bf16.msrb.mxu0 %v2817_v11  ;;  %1828 = vmatpush.bf16.msrb.mxu2 %v2821_v14  ;;  %v2858_v0 = vld [vmem:[%s4489_s3 + $0x2c8] sm:$0xf0]  ;;  %v2776_v11 = vld [vmem:[%s4489_s3 + $0x220] sm:$0xf]  ;;  %v2712_v14 = vpack.c.bf16 %v1075_v62, %v1082_v1  ;;  %v2848_v22 = vld [vmem:[%s4489_s3 + $0x2b0] sm:$0xf] }
 0x100   : > { %v2861_v21 = vor.u32 %v3090_v52, %v2858_v0  ;;  %v1098_v23 = vsel %vm281_vm4, %v1089_v50, 0.0 }
 0x101   : > { %v4285_v38 = vmax.f32 %v1063_v26, 0.0  ;;  %v2850_v26 = vld [vmem:[%s4489_s3 + $0x2b8] sm:$0xf0] }
 0x103   : > { %1801 = vmatpush.bf16.msrb.mxu0 %v2809_v28  ;;  %1829 = vmatpush.bf16.msrb.mxu2 %v2813_v30  ;;  %v1139_v44 = vpack.c.bf16 %v4285_v38, %v4283_v37  ;;  %v1076_v4 = vrot.slane %v4285_v38, 7  ;;  %v2777_v28 = vor.u32 %v3071_v15, %v2776_v11  ;;  %v2781_v30 = vor.u32 %v3070_v17, %v2778_v18 }
 0x105   : > { %1355 = vmatmul.bf16.vlgmr.msrb.gmra.mxu1 %v1139_v44  ;;  %1383 = vmatmul.bf16.vlgmr.msrb.gmra.mxu3 %v1139_v44  ;;  %v1077_v31 = vsel %vm264_vm0, %v1073_v19, %v1076_v4  ;;  %v3087_v44 = vld [vmem:[%s4489_s3 + $0x2a4] sm:$0xf0] }
 0x106   : > { %1814 = vmatpush.bf16.msrb.mxu1 %v2881_v39  ;;  %1842 = vmatpush.bf16.msrb.mxu3 %v2885_v40  ;;  %v2849_v39 = vor.u32 %v3089_v24, %v2848_v22  ;;  %v2853_v40 = vor.u32 %v3088_v25, %v2850_v26  ;;  %v2716_v43 = vpack.c.bf16 %v1077_v31, %v1083_v36 }
 0x107   : > { %1802 = vmatpush.bf16.msrb.mxu0 %v2801_v45  ;;  %1830 = vmatpush.bf16.msrb.mxu2 %v2805_v46  ;;  %v3086_v45 = vld [vmem:[%s4489_s3 + $0x2a4] sm:$0xf]  ;;  %v2842_v46 = vld [vmem:[%s4489_s3 + $0x2a8] sm:$0xf0] }
 0x10a   : > { %1815 = vmatpush.bf16.msrb.mxu1 %v2873_v55  ;;  %1843 = vmatpush.bf16.msrb.mxu3 %v2877_v7  ;;  %v2841_v55 = vor.u32 %v3087_v44, %v2840_v41  ;;  %v2845_v7 = vor.u32 %v3086_v45, %v2842_v46 }
 0x10b   : > { %1803 = vmatpush.bf16.msrb.mxu0 %v2793_v13  ;;  %1831 = vmatpush.bf16.msrb.mxu2 %v2797_v56  ;;  %v3084_v13 = vld [vmem:[%s4489_s3 + $0x294] sm:$0xf]  ;;  %v1088_v56 = vrot.slane %v4241_v2, 1  ;;  %v3083_v2 = vld [vmem:[%s4489_s3 + $0x284] sm:$0xf0] }
 0x10c   : > { %v2837_v12 = vor.u32 %v3084_v13, %v2834_v3  ;;  %v2825_v48 = vor.u32 %v3083_v2, %v2824_v58  ;;  %v3111_v58 = vld [vmem:[%s3448_s23 + $0x10] sm:$0xff] }
 0x10d   : > { %v1090_v16 = vsel %vm281_vm4, %v1088_v56, %v1089_v50 }
 0x10e   : > { %1816 = vmatpush.bf16.msrb.mxu1 %v2865_v60  ;;  %1844 = vmatpush.bf16.msrb.mxu3 %v2869_v61  ;;  %v2826_v60 = vld [vmem:[%s4489_s3 + $0x288] sm:$0xf0]  ;;  %v1092_v61 = vrot.slane %v4285_v38, 1  ;;  %v2888_v62 = vpack.c.bf16 %v1098_v23, %v1090_v16 }
 0x10f   : > { %2713 = vmatmul.msk.bf16.vlgmr.msra.gmra.mxu0 %vm3634_vm3, %v2712_v14  ;;  %2721 = vmatmul.msk.bf16.vlgmr.msra.gmra.mxu2 %vm3634_vm3, %v2712_v14  ;;  %v2829_v52 = vor.u32 %v3082_v59, %v2826_v60 }
 0x110   : > { %1804 = vmatpush.bf16.msrb.mxu0 %v2785_v5  ;;  %1832 = vmatpush.bf16.msrb.mxu2 %v2789_v10  ;;  %v1099_v0 = vsel %vm281_vm4, %v1092_v61, 0.0  ;;  %v1093_v1 = vsel %vm281_vm4, %v1091_v63, %v1092_v61 }
 0x111   : > { %v2892_v38 = vpack.c.bf16 %v1099_v0, %v1093_v1 }
 0x112   : > { %1817 = vmatpush.bf16.msrb.mxu1 %v2857_v20  ;;  %1845 = vmatpush.bf16.msrb.mxu3 %v2861_v21 }
 0x114   : > { %1805 = vmatpush.bf16.msrb.mxu0 %v2777_v28  ;;  %1833 = vmatpush.bf16.msrb.mxu2 %v2781_v30  ;;  %v1860_v30 = vld [vmem:[%s4490_s4] sm:$0x3] }
 0x115   : > { %2717 = vmatmul.msk.bf16.vlgmr.msra.gmra.mxu1 %vm3634_vm3, %v2716_v43  ;;  %2725 = vmatmul.msk.bf16.vlgmr.msra.gmra.mxu3 %vm3634_vm3, %v2716_v43  ;;  %v1862_v35 = vperm.slane %v1860_v30, 0  ;;  %v1863_v46 = vperm.slane %v1860_v30, 1 }
 0x116   : > { %1818 = vmatpush.bf16.msrb.mxu1 %v2849_v39  ;;  %1846 = vmatpush.bf16.msrb.mxu3 %v2853_v40 }
 0x118   : > { %1806 = vmatpush.bf16.msrb.mxu0 %v2769_v47  ;;  %1834 = vmatpush.bf16.msrb.mxu2 %v2773_v29 }
 0x11a   : > { %1819 = vmatpush.bf16.msrb.mxu1 %v2841_v55  ;;  %1847 = vmatpush.bf16.msrb.mxu3 %v2845_v7 }
 0x11c   : > { %1807 = vmatpush.bf16.msrb.mxu0 %v2761_v57  ;;  %1835 = vmatpush.bf16.msrb.mxu2 %v2765_v9  ;;  %v3110_v57 = vld [vmem:[%s3448_s23 + $0x8] sm:$0xff] }
 0x11e   : > { %1820 = vmatpush.bf16.msrb.mxu1 %v2833_v27  ;;  %1848 = vmatpush.bf16.msrb.mxu3 %v2837_v12 }
 0x11f   : > { %2889 = vmatmul.msk.bf16.vlgmr.msrb.gmra.mxu0 %vm3806_vm6, %v2888_v62  ;;  %2897 = vmatmul.msk.bf16.vlgmr.msrb.gmra.mxu2 %vm3806_vm6, %v2888_v62  ;;  %v3112_v62 = vld [vmem:[%s3448_s23 + $0x18] sm:$0xff] }
 0x122   : > { %1821 = vmatpush.bf16.msrb.mxu1 %v2825_v48  ;;  %1849 = vmatpush.bf16.msrb.mxu3 %v2829_v52 }
 0x125   : > { %2893 = vmatmul.msk.bf16.vlgmr.msrb.gmra.mxu1 %vm3806_vm6, %v2892_v38  ;;  %2901 = vmatmul.msk.bf16.vlgmr.msrb.gmra.mxu3 %vm3806_vm6, %v2892_v38 }
 0x17b   : > { %v1342_v37 = vpop.f32.mrf.mxu0 }
 0x181   : > { %v1370_v4 = vpop.f32.mrf.mxu2 }
 0x182   : > { %v1356_v5 = vpop.f32.mrf.mxu1 }
 0x183   : > { %v1344_v10 = vpop.f32.mrf.mxu0  ;;  %v1357_v26 = vadd.f32 %v1356_v5, %v1342_v37 }
 0x188   : > { %v1384_v11 = vpop.f32.mrf.mxu3 }
 0x189   : > { %v1372_v14 = vpop.f32.mrf.mxu2  ;;  %v1385_v36 = vadd.f32 %v1384_v11, %v1370_v4 }
 0x18a   : > { %v1358_v15 = vpop.f32.mrf.mxu1 }
 0x18b   : > { %v1359_v41 = vadd.f32 %v1358_v15, %v1344_v10 }
 0x18c   : > { %v1558_v17 = vpop.f32.mrf.mxu0 }
 0x18d   : > { %v1559_v31 = vadd.f32 %v1558_v17, %v1357_v26 }
 0x190   : > { %v1386_v18 = vpop.f32.mrf.mxu3 }
 0x191   : > { %v1387_v8 = vadd.f32 %v1386_v18, %v1372_v14 }
 0x192   : > { %v1572_v19 = vpop.f32.mrf.mxu1  ;;  %v1586_v20 = vpop.f32.mrf.mxu2 }
 0x193   : > { %v1573_v33 = vadd.f32 %v1572_v19, %v1559_v31  ;;  %v1587_v43 = vadd.f32 %v1586_v20, %v1385_v36 }
 0x194   : > { %v1560_v21 = vpop.f32.mrf.mxu0 }
 0x195   : > { %v1561_v47 = vadd.f32 %v1560_v21, %v1359_v41 }
 0x198   : > { %v1600_v22 = vpop.f32.mrf.mxu3 }
 0x199   : > { %v1601_v29 = vadd.f32 %v1600_v22, %v1587_v43 }
 0x19a   : > { %v1574_v24 = vpop.f32.mrf.mxu1  ;;  %v1588_v25 = vpop.f32.mrf.mxu2 }
 0x19b   : > { %v1575_v55 = vadd.f32 %v1574_v24, %v1561_v47  ;;  %v1589_v56 = vadd.f32 %v1588_v25, %v1387_v8 }
 0x19c   : > { %v1809_v28 = vpop.f32.mrf.mxu0 }
 0x1a0   : > { %v1602_v6 = vpop.f32.mrf.mxu3 }
 0x1a1   : > { %v1603_v16 = vadd.f32 %v1602_v6, %v1589_v56 }
 0x1a2   : > { %v1823_v32 = vpop.f32.mrf.mxu1  ;;  %v1837_v40 = vpop.f32.mrf.mxu2 }
 0x1a3   : > { %v1824_v34 = vadd.f32 %v1823_v32, %v1809_v28 }
 0x1a4   : > { %v1811_v54 = vpop.f32.mrf.mxu0 }
 0x1a5   : > { %v1856_v39 = vadd.f32 %v1824_v34, %v1573_v33 }
 0x1a7   : > { %v1866_v44 = vadd.f32 %v1862_v35, %v1856_v39 }
 0x1a8   : > { %v1851_v45 = vpop.f32.mrf.mxu3 }
 0x1a9   : > { %v1870_v51 = vadd.f32 %v3109_v49, %v1866_v44  ;;  %v1852_v53 = vadd.f32 %v1851_v45, %v1837_v40 }
 0x1aa   : > { %v1825_v50 = vpop.f32.mrf.mxu1  ;;  %v1839_v27 = vpop.f32.mrf.mxu2 }
 0x1ab   : > { %1874 = vst [vmem:[%s4473_s26] sm:$0xff] %v1870_v51  ;;  %v1857_v7 = vadd.f32 %v1852_v53, %v1601_v29  ;;  %v1826_v42 = vadd.f32 %v1825_v50, %v1811_v54 }
 0x1ad   : > { %v1867_v13 = vadd.f32 %v1863_v46, %v1857_v7  ;;  %v1858_v3 = vadd.f32 %v1826_v42, %v1575_v55 }
 0x1af   : > { %v1871_v9 = vadd.f32 %v3110_v57, %v1867_v13  ;;  %v1868_v23 = vadd.f32 %v1862_v35, %v1858_v3 }
 0x1b0   : > { %v1853_v12 = vpop.f32.mrf.mxu3 }
 0x1b1   : > { %1875 = vst [vmem:[%s4473_s26 + $0x8] sm:$0xff] %v1871_v9  ;;  %v1872_v2 = vadd.f32 %v3111_v58, %v1868_v23  ;;  %v1854_v59 = vadd.f32 %v1853_v12, %v1839_v27 }
 0x1b3   : > { %1876 = vst [vmem:[%s4473_s26 + $0x10] sm:$0xff] %v1872_v2  ;;  %v1859_v60 = vadd.f32 %v1854_v59, %v1603_v16 }
 0x1b5   : > { %v1869_v61 = vadd.f32 %v1863_v46, %v1859_v60 }
 0x1b7   : > { %v1873_v63 = vadd.f32 %v3112_v62, %v1869_v61 }
 0x1b9   : > { %1877 = vst [vmem:[%s4473_s26 + $0x18] sm:$0xff] %v1873_v63 }
 0x1ba PF: > { %s15_s18 = sadd.s32 1, %s3119_s18  }
 0x1bb   : > { %p12_p4 = scmp.ge.s32.totalorder %s15_s18, 4  }
 0x1bd   :  { %14 = sbr.rel (!%p12_p4) target bundleno = 1 (0x1), region = 74 }

</bundles_post_ra>
